<compile_context>
chip_gen: v6e
topology: v6e:2x2x1
jax: 0.10.0
libtpu: 0.0.40
codegen_flags: <defaults>
</compile_context>

<pallas_src>
import functools

import jax
import jax.numpy as jnp
from jax.experimental import pallas as pl
from jax.experimental.pallas import tpu as pltpu


def _round_up(x, m):
    return (x + m - 1) // m * m


def _lstm_clf_kernel(x_ref, wih_f_ref, whh_f_ref, b_f_ref,
                     wih_b_ref, whh_b_ref, b_b_ref,
                     wdec_ref, bdec_ref, out_ref):
    T, B, E = x_ref.shape
    H = whh_f_ref.shape[0]

    whh_f = whh_f_ref[...]
    whh_b = whh_b_ref[...]

    # ---- Hoisted input projections: one GEMM per direction (bias folded in). ----
    x2 = x_ref[...].reshape(T * B, E)                              # (T*B, E)
    gx_f = (jnp.dot(x2, wih_f_ref[...], preferred_element_type=jnp.float32)
            + b_f_ref[...]).reshape(T, B, 4 * H)                   # (T, B, 4H)
    gx_b = (jnp.dot(x2, wih_b_ref[...], preferred_element_type=jnp.float32)
            + b_b_ref[...]).reshape(T, B, 4 * H)

    # Gate columns are packed [i, f, o, g]: one sigmoid over 3H, one tanh over H.
    def lstm_step(gates, c):
        sig = jax.nn.sigmoid(gates[:, :3 * H])
        i = sig[:, 0 * H:1 * H]
        f = sig[:, 1 * H:2 * H]
        o = sig[:, 2 * H:3 * H]
        g = jnp.tanh(gates[:, 3 * H:])
        c_new = f * c + i * g
        h_new = o * jnp.tanh(c_new)
        return h_new, c_new

    zeros = jnp.zeros((B, H), jnp.float32)
    hf, cf = zeros, zeros
    hb, cb = zeros, zeros
    h0_f = hT_b = None

    # ---- Fused, fully unrolled recurrence: fwd on x[t], bwd on x[T-1-t]. ----
    # TODO(synk): for long sequences, switch to a T-tiled grid axis (or
    # fori_loop + VMEM scratch for gx) instead of full static unrolling.
    for t in range(T):
        gates_f = gx_f[t] + jnp.dot(hf, whh_f, preferred_element_type=jnp.float32)
        gates_b = gx_b[T - 1 - t] + jnp.dot(hb, whh_b,
                                            preferred_element_type=jnp.float32)
        hf, cf = lstm_step(gates_f, cf)
        hb, cb = lstm_step(gates_b, cb)
        if t == 0:
            h0_f = hf        # forward output at t=0
            hT_b = hb        # backward output at t=T-1 (its first step)
    hT_f = hf                # forward output at t=T-1
    h0_b = hb                # backward output at t=0 (its last step)

    # encoding = cat(outputs[0], outputs[-1], -1)
    #          = [h_fwd(0), h_bwd(0), h_fwd(T-1), h_bwd(T-1)]   -> (B, 4H)
    # Decoder done as four partial matmuls against wdec row-blocks (no lane concat).
    wdec = wdec_ref[...]
    logits = (jnp.dot(h0_f, wdec[0 * H:1 * H, :], preferred_element_type=jnp.float32)
              + jnp.dot(h0_b, wdec[1 * H:2 * H, :], preferred_element_type=jnp.float32)
              + jnp.dot(hT_f, wdec[2 * H:3 * H, :], preferred_element_type=jnp.float32)
              + jnp.dot(hT_b, wdec[3 * H:4 * H, :], preferred_element_type=jnp.float32)
              + bdec_ref[...])
    out_ref[...] = logits.astype(out_ref.dtype)


def _repack_gates(w, H):
    """Reorder gate columns (..., 4H) from PyTorch [i,f,g,o] to kernel [i,f,o,g]."""
    return jnp.concatenate(
        [w[..., :2 * H], w[..., 3 * H:4 * H], w[..., 2 * H:3 * H]], axis=-1)


@functools.partial(jax.jit, static_argnums=())
def lstm_classifier_forward(tokens, params):
    """tokens: (batch, seq) int32 -> logits (batch, num_classes) float32."""
    # Embedding gather is glue (plain JAX); recurrence + decoder live in Pallas.
    emb = params["embedding"][tokens.T]                 # (T, B, E) float32
    T, B, E = emb.shape
    H = params["whh_f"].shape[0]
    C = params["wdec"].shape[1]

    # Repack gate order once, outside the kernel.
    wih_f = _repack_gates(params["wih_f"], H)
    whh_f = _repack_gates(params["whh_f"], H)
    b_f = _repack_gates(params["b_f"], H)
    wih_b = _repack_gates(params["wih_b"], H)
    whh_b = _repack_gates(params["whh_b"], H)
    b_b = _repack_gates(params["b_b"], H)

    # Pad batch to a sublane/block multiple; grid over batch blocks ("parallel").
    b_block = min(128, _round_up(B, 8))
    b_pad = _round_up(B, b_block)
    if b_pad != B:
        emb = jnp.pad(emb, ((0, 0), (0, b_pad - B), (0, 0)))
    grid = (b_pad // b_block,)

    def rep_spec(shape):
        n = len(shape)
        return pl.BlockSpec(shape, lambda i, n=n: (0,) * n)   # weights resident

    weight_args = (wih_f, whh_f, b_f, wih_b, whh_b, b_b,
                   params["wdec"], params["bdec"])

    out = pl.pallas_call(
        _lstm_clf_kernel,
        out_shape=jax.ShapeDtypeStruct((b_pad, C), jnp.float32),
        grid=grid,
        in_specs=[pl.BlockSpec((T, b_block, E), lambda i: (0, i, 0))]
                 + [rep_spec(w.shape) for w in weight_args],
        out_specs=pl.BlockSpec((b_block, C), lambda i: (i, 0)),
        compiler_params=pltpu.CompilerParams(
            dimension_semantics=("parallel",)),
    )(emb, *weight_args)
    return out[:B]


def _reference_forward(tokens, params):
    """Pure-JAX reference mirroring torch.nn.LSTM(bidirectional=True) semantics."""
    emb = params["embedding"][tokens.T]                 # (T, B, E)
    T, B, _ = emb.shape
    H = params["whh_f"].shape[0]

    def cell(x_t, h, c, wih, whh, b):
        g = x_t @ wih + h @ whh + b
        i = jax.nn.sigmoid(g[:, 0 * H:1 * H])
        f = jax.nn.sigmoid(g[:, 1 * H:2 * H])
        gg = jnp.tanh(g[:, 2 * H:3 * H])
        o = jax.nn.sigmoid(g[:, 3 * H:4 * H])
        c = f * c + i * gg
        h = o * jnp.tanh(c)
        return h, c

    zeros = jnp.zeros((B, H), jnp.float32)
    h, c = zeros, zeros
    fwd = []
    for t in range(T):
        h, c = cell(emb[t], h, c, params["wih_f"], params["whh_f"], params["b_f"])
        fwd.append(h)
    h, c = zeros, zeros
    bwd = [None] * T
    for t in range(T - 1, -1, -1):
        h, c = cell(emb[t], h, c, params["wih_b"], params["whh_b"], params["b_b"])
        bwd[t] = h
    out0 = jnp.concatenate([fwd[0], bwd[0]], axis=-1)
    outL = jnp.concatenate([fwd[-1], bwd[-1]], axis=-1)
    enc = jnp.concatenate([out0, outL], axis=-1)
    return enc @ params["wdec"] + params["bdec"]


def make_params(key, vocab_size, embedding_dim, num_hidden, num_classes):
    E, H, C = embedding_dim, num_hidden, num_classes
    ks = jax.random.split(key, 12)
    s = 0.1
    return {
        "embedding": jax.random.normal(ks[0], (vocab_size, E), jnp.float32),
        "wih_f": s * jax.random.normal(ks[1], (E, 4 * H), jnp.float32),
        "whh_f": s * jax.random.normal(ks[2], (H, 4 * H), jnp.float32),
        "b_f":   s * jax.random.normal(ks[3], (1, 4 * H), jnp.float32),
        "wih_b": s * jax.random.normal(ks[4], (E, 4 * H), jnp.float32),
        "whh_b": s * jax.random.normal(ks[5], (H, 4 * H), jnp.float32),
        "b_b":   s * jax.random.normal(ks[6], (1, 4 * H), jnp.float32),
        "wdec":  s * jax.random.normal(ks[7], (4 * H, C), jnp.float32),
        "bdec":  s * jax.random.normal(ks[8], (1, C), jnp.float32),
    }


if __name__ == "__main__":
    VOCAB, EMB, HID, CLS = 50, 32, 32, 2
    BATCH, SEQ = 2, 8

    key = jax.random.PRNGKey(0)
    pkey, tkey = jax.random.split(key)
    params = make_params(pkey, VOCAB, EMB, HID, CLS)
    tokens = jax.random.randint(tkey, (BATCH, SEQ), 0, VOCAB, dtype=jnp.int32)

    logits = lstm_classifier_forward(tokens, params)
    logits = jax.block_until_ready(logits)

    ref = _reference_forward(tokens, params)
    assert logits.shape == (BATCH, CLS)
    assert jnp.allclose(logits, ref, atol=1e-3, rtol=1e-3), (logits, ref)

    print("KERNEL_OK")
</pallas_src>

<mosaic_0001>
module attributes {stable_mosaic.version = 11 : i64} {
  func.func @_lstm_clf_kernel(%arg0: i32, %arg1: memref<8x8x32xf32, #tpu.memory_space<vmem>>, %arg2: memref<32x128xf32, #tpu.memory_space<vmem>>, %arg3: memref<32x128xf32, #tpu.memory_space<vmem>>, %arg4: memref<1x128xf32, #tpu.memory_space<vmem>>, %arg5: memref<32x128xf32, #tpu.memory_space<vmem>>, %arg6: memref<32x128xf32, #tpu.memory_space<vmem>>, %arg7: memref<1x128xf32, #tpu.memory_space<vmem>>, %arg8: memref<128x2xf32, #tpu.memory_space<vmem>>, %arg9: memref<1x2xf32, #tpu.memory_space<vmem>>, %arg10: memref<8x2xf32, #tpu.memory_space<vmem>>) attributes {dimension_semantics = [#tpu.dimension_semantics<parallel>], iteration_bounds = array<i64: 1>, scalar_prefetch = 0 : i64, scratch_operands = 0 : i64, tpu.core_type = #tpu.core_type<tc>, window_params = [{transform_indices = @transform_0, window_bounds = array<i64: 8, 8, 32>}, {pipeline_mode = #tpu.pipeline_mode<synchronous>, transform_indices = @transform_1, window_bounds = array<i64: 32, 128>}, {pipeline_mode = #tpu.pipeline_mode<synchronous>, transform_indices = @transform_2, window_bounds = array<i64: 32, 128>}, {pipeline_mode = #tpu.pipeline_mode<synchronous>, transform_indices = @transform_3, window_bounds = array<i64: 1, 128>}, {pipeline_mode = #tpu.pipeline_mode<synchronous>, transform_indices = @transform_4, window_bounds = array<i64: 32, 128>}, {pipeline_mode = #tpu.pipeline_mode<synchronous>, transform_indices = @transform_5, window_bounds = array<i64: 32, 128>}, {pipeline_mode = #tpu.pipeline_mode<synchronous>, transform_indices = @transform_6, window_bounds = array<i64: 1, 128>}, {pipeline_mode = #tpu.pipeline_mode<synchronous>, transform_indices = @transform_7, window_bounds = array<i64: 128, 2>}, {pipeline_mode = #tpu.pipeline_mode<synchronous>, transform_indices = @transform_8, window_bounds = array<i64: 1, 2>}, {transform_indices = @transform_9, window_bounds = array<i64: 8, 2>}]} {
    %c0 = arith.constant 0 : index
    %c0_0 = arith.constant 0 : index
    %0 = vector.load %arg3[%c0, %c0_0] : memref<32x128xf32, #tpu.memory_space<vmem>>, vector<32x128xf32>
    %c0_1 = arith.constant 0 : index
    %c0_2 = arith.constant 0 : index
    %1 = vector.load %arg6[%c0_1, %c0_2] : memref<32x128xf32, #tpu.memory_space<vmem>>, vector<32x128xf32>
    %c0_3 = arith.constant 0 : index
    %c0_4 = arith.constant 0 : index
    %c0_5 = arith.constant 0 : index
    %2 = vector.load %arg1[%c0_3, %c0_4, %c0_5] : memref<8x8x32xf32, #tpu.memory_space<vmem>>, vector<8x8x32xf32>
    %3 = vector.shape_cast %2 : vector<8x8x32xf32> to vector<64x32xf32>
    %c0_6 = arith.constant 0 : index
    %c0_7 = arith.constant 0 : index
    %4 = vector.load %arg2[%c0_6, %c0_7] : memref<32x128xf32, #tpu.memory_space<vmem>>, vector<32x128xf32>
    %cst = arith.constant dense<0.000000e+00> : vector<64x128xf32>
    %5 = tpu.matmul %3, %4, %cst {dimension_numbers = #tpu.dot_dimension_numbers<[1], [0], [0], [1], [0, 0, 1, 1], [], []>} : vector<64x32xf32>, vector<32x128xf32>, vector<64x128xf32> -> vector<64x128xf32>
    %c0_8 = arith.constant 0 : index
    %c0_9 = arith.constant 0 : index
    %6 = vector.load %arg4[%c0_8, %c0_9] : memref<1x128xf32, #tpu.memory_space<vmem>>, vector<1x128xf32>
    %7 = vector.broadcast %6 : vector<1x128xf32> to vector<64x128xf32>
    %8 = arith.addf %5, %7 : vector<64x128xf32>
    %9 = vector.shape_cast %8 : vector<64x128xf32> to vector<8x8x128xf32>
    %c0_10 = arith.constant 0 : index
    %c0_11 = arith.constant 0 : index
    %10 = vector.load %arg5[%c0_10, %c0_11] : memref<32x128xf32, #tpu.memory_space<vmem>>, vector<32x128xf32>
    %cst_12 = arith.constant dense<0.000000e+00> : vector<64x128xf32>
    %11 = tpu.matmul %3, %10, %cst_12 {dimension_numbers = #tpu.dot_dimension_numbers<[1], [0], [0], [1], [0, 0, 1, 1], [], []>} : vector<64x32xf32>, vector<32x128xf32>, vector<64x128xf32> -> vector<64x128xf32>
    %c0_13 = arith.constant 0 : index
    %c0_14 = arith.constant 0 : index
    %12 = vector.load %arg7[%c0_13, %c0_14] : memref<1x128xf32, #tpu.memory_space<vmem>>, vector<1x128xf32>
    %13 = vector.broadcast %12 : vector<1x128xf32> to vector<64x128xf32>
    %14 = arith.addf %11, %13 : vector<64x128xf32>
    %15 = vector.shape_cast %14 : vector<64x128xf32> to vector<8x8x128xf32>
    %cst_15 = arith.constant 0.000000e+00 : f32
    %16 = vector.broadcast %cst_15 : f32 to vector<8x32xf32>
    %17 = vector.extract_strided_slice %9 {offsets = [0, 0, 0], sizes = [1, 8, 128], strides = [1, 1, 1]} : vector<8x8x128xf32> to vector<1x8x128xf32>
    %18 = vector.shape_cast %17 : vector<1x8x128xf32> to vector<8x128xf32>
    %cst_16 = arith.constant dense<0.000000e+00> : vector<8x128xf32>
    %19 = tpu.matmul %16, %0, %cst_16 {dimension_numbers = #tpu.dot_dimension_numbers<[1], [0], [0], [1], [0, 0, 1, 1], [], []>} : vector<8x32xf32>, vector<32x128xf32>, vector<8x128xf32> -> vector<8x128xf32>
    %20 = arith.addf %18, %19 : vector<8x128xf32>
    %21 = vector.extract_strided_slice %15 {offsets = [7, 0, 0], sizes = [1, 8, 128], strides = [1, 1, 1]} : vector<8x8x128xf32> to vector<1x8x128xf32>
    %22 = vector.shape_cast %21 : vector<1x8x128xf32> to vector<8x128xf32>
    %cst_17 = arith.constant dense<0.000000e+00> : vector<8x128xf32>
    %23 = tpu.matmul %16, %1, %cst_17 {dimension_numbers = #tpu.dot_dimension_numbers<[1], [0], [0], [1], [0, 0, 1, 1], [], []>} : vector<8x32xf32>, vector<32x128xf32>, vector<8x128xf32> -> vector<8x128xf32>
    %24 = arith.addf %22, %23 : vector<8x128xf32>
    %25 = vector.extract_strided_slice %20 {offsets = [0, 0], sizes = [8, 96], strides = [1, 1]} : vector<8x128xf32> to vector<8x96xf32>
    %26 = arith.negf %25 : vector<8x96xf32>
    %27 = math.exp %26 : vector<8x96xf32>
    %cst_18 = arith.constant 1.000000e+00 : f32
    %28 = vector.broadcast %cst_18 : f32 to vector<8x96xf32>
    %29 = arith.addf %28, %27 : vector<8x96xf32>
    %30 = arith.divf %28, %29 : vector<8x96xf32>
    %31 = vector.extract_strided_slice %30 {offsets = [0, 0], sizes = [8, 32], strides = [1, 1]} : vector<8x96xf32> to vector<8x32xf32>
    %32 = vector.extract_strided_slice %30 {offsets = [0, 32], sizes = [8, 32], strides = [1, 1]} : vector<8x96xf32> to vector<8x32xf32>
    %33 = vector.extract_strided_slice %30 {offsets = [0, 64], sizes = [8, 32], strides = [1, 1]} : vector<8x96xf32> to vector<8x32xf32>
    %34 = vector.extract_strided_slice %20 {offsets = [0, 96], sizes = [8, 32], strides = [1, 1]} : vector<8x128xf32> to vector<8x32xf32>
    %35 = math.tanh %34 : vector<8x32xf32>
    %36 = arith.mulf %32, %16 : vector<8x32xf32>
    %37 = arith.mulf %31, %35 : vector<8x32xf32>
    %38 = arith.addf %36, %37 : vector<8x32xf32>
    %39 = math.tanh %38 : vector<8x32xf32>
    %40 = arith.mulf %33, %39 : vector<8x32xf32>
    %41 = vector.extract_strided_slice %24 {offsets = [0, 0], sizes = [8, 96], strides = [1, 1]} : vector<8x128xf32> to vector<8x96xf32>
    %42 = arith.negf %41 : vector<8x96xf32>
    %43 = math.exp %42 : vector<8x96xf32>
    %cst_19 = arith.constant 1.000000e+00 : f32
    %44 = vector.broadcast %cst_19 : f32 to vector<8x96xf32>
    %45 = arith.addf %44, %43 : vector<8x96xf32>
    %46 = arith.divf %44, %45 : vector<8x96xf32>
    %47 = vector.extract_strided_slice %46 {offsets = [0, 0], sizes = [8, 32], strides = [1, 1]} : vector<8x96xf32> to vector<8x32xf32>
    %48 = vector.extract_strided_slice %46 {offsets = [0, 32], sizes = [8, 32], strides = [1, 1]} : vector<8x96xf32> to vector<8x32xf32>
    %49 = vector.extract_strided_slice %46 {offsets = [0, 64], sizes = [8, 32], strides = [1, 1]} : vector<8x96xf32> to vector<8x32xf32>
    %50 = vector.extract_strided_slice %24 {offsets = [0, 96], sizes = [8, 32], strides = [1, 1]} : vector<8x128xf32> to vector<8x32xf32>
    %51 = math.tanh %50 : vector<8x32xf32>
    %52 = arith.mulf %48, %16 : vector<8x32xf32>
    %53 = arith.mulf %47, %51 : vector<8x32xf32>
    %54 = arith.addf %52, %53 : vector<8x32xf32>
    %55 = math.tanh %54 : vector<8x32xf32>
    %56 = arith.mulf %49, %55 : vector<8x32xf32>
    %57 = vector.extract_strided_slice %9 {offsets = [1, 0, 0], sizes = [1, 8, 128], strides = [1, 1, 1]} : vector<8x8x128xf32> to vector<1x8x128xf32>
    %58 = vector.shape_cast %57 : vector<1x8x128xf32> to vector<8x128xf32>
    %cst_20 = arith.constant dense<0.000000e+00> : vector<8x128xf32>
    %59 = tpu.matmul %40, %0, %cst_20 {dimension_numbers = #tpu.dot_dimension_numbers<[1], [0], [0], [1], [0, 0, 1, 1], [], []>} : vector<8x32xf32>, vector<32x128xf32>, vector<8x128xf32> -> vector<8x128xf32>
    %60 = arith.addf %58, %59 : vector<8x128xf32>
    %61 = vector.extract_strided_slice %15 {offsets = [6, 0, 0], sizes = [1, 8, 128], strides = [1, 1, 1]} : vector<8x8x128xf32> to vector<1x8x128xf32>
    %62 = vector.shape_cast %61 : vector<1x8x128xf32> to vector<8x128xf32>
    %cst_21 = arith.constant dense<0.000000e+00> : vector<8x128xf32>
    %63 = tpu.matmul %56, %1, %cst_21 {dimension_numbers = #tpu.dot_dimension_numbers<[1], [0], [0], [1], [0, 0, 1, 1], [], []>} : vector<8x32xf32>, vector<32x128xf32>, vector<8x128xf32> -> vector<8x128xf32>
    %64 = arith.addf %62, %63 : vector<8x128xf32>
    %65 = vector.extract_strided_slice %60 {offsets = [0, 0], sizes = [8, 96], strides = [1, 1]} : vector<8x128xf32> to vector<8x96xf32>
    %66 = arith.negf %65 : vector<8x96xf32>
    %67 = math.exp %66 : vector<8x96xf32>
    %cst_22 = arith.constant 1.000000e+00 : f32
    %68 = vector.broadcast %cst_22 : f32 to vector<8x96xf32>
    %69 = arith.addf %68, %67 : vector<8x96xf32>
    %70 = arith.divf %68, %69 : vector<8x96xf32>
    %71 = vector.extract_strided_slice %70 {offsets = [0, 0], sizes = [8, 32], strides = [1, 1]} : vector<8x96xf32> to vector<8x32xf32>
    %72 = vector.extract_strided_slice %70 {offsets = [0, 32], sizes = [8, 32], strides = [1, 1]} : vector<8x96xf32> to vector<8x32xf32>
    %73 = vector.extract_strided_slice %70 {offsets = [0, 64], sizes = [8, 32], strides = [1, 1]} : vector<8x96xf32> to vector<8x32xf32>
    %74 = vector.extract_strided_slice %60 {offsets = [0, 96], sizes = [8, 32], strides = [1, 1]} : vector<8x128xf32> to vector<8x32xf32>
    %75 = math.tanh %74 : vector<8x32xf32>
    %76 = arith.mulf %72, %38 : vector<8x32xf32>
    %77 = arith.mulf %71, %75 : vector<8x32xf32>
    %78 = arith.addf %76, %77 : vector<8x32xf32>
    %79 = math.tanh %78 : vector<8x32xf32>
    %80 = arith.mulf %73, %79 : vector<8x32xf32>
    %81 = vector.extract_strided_slice %64 {offsets = [0, 0], sizes = [8, 96], strides = [1, 1]} : vector<8x128xf32> to vector<8x96xf32>
    %82 = arith.negf %81 : vector<8x96xf32>
    %83 = math.exp %82 : vector<8x96xf32>
    %cst_23 = arith.constant 1.000000e+00 : f32
    %84 = vector.broadcast %cst_23 : f32 to vector<8x96xf32>
    %85 = arith.addf %84, %83 : vector<8x96xf32>
    %86 = arith.divf %84, %85 : vector<8x96xf32>
    %87 = vector.extract_strided_slice %86 {offsets = [0, 0], sizes = [8, 32], strides = [1, 1]} : vector<8x96xf32> to vector<8x32xf32>
    %88 = vector.extract_strided_slice %86 {offsets = [0, 32], sizes = [8, 32], strides = [1, 1]} : vector<8x96xf32> to vector<8x32xf32>
    %89 = vector.extract_strided_slice %86 {offsets = [0, 64], sizes = [8, 32], strides = [1, 1]} : vector<8x96xf32> to vector<8x32xf32>
    %90 = vector.extract_strided_slice %64 {offsets = [0, 96], sizes = [8, 32], strides = [1, 1]} : vector<8x128xf32> to vector<8x32xf32>
    %91 = math.tanh %90 : vector<8x32xf32>
    %92 = arith.mulf %88, %54 : vector<8x32xf32>
    %93 = arith.mulf %87, %91 : vector<8x32xf32>
    %94 = arith.addf %92, %93 : vector<8x32xf32>
    %95 = math.tanh %94 : vector<8x32xf32>
    %96 = arith.mulf %89, %95 : vector<8x32xf32>
    %97 = vector.extract_strided_slice %9 {offsets = [2, 0, 0], sizes = [1, 8, 128], strides = [1, 1, 1]} : vector<8x8x128xf32> to vector<1x8x128xf32>
    %98 = vector.shape_cast %97 : vector<1x8x128xf32> to vector<8x128xf32>
    %cst_24 = arith.constant dense<0.000000e+00> : vector<8x128xf32>
    %99 = tpu.matmul %80, %0, %cst_24 {dimension_numbers = #tpu.dot_dimension_numbers<[1], [0], [0], [1], [0, 0, 1, 1], [], []>} : vector<8x32xf32>, vector<32x128xf32>, vector<8x128xf32> -> vector<8x128xf32>
    %100 = arith.addf %98, %99 : vector<8x128xf32>
    %101 = vector.extract_strided_slice %15 {offsets = [5, 0, 0], sizes = [1, 8, 128], strides = [1, 1, 1]} : vector<8x8x128xf32> to vector<1x8x128xf32>
    %102 = vector.shape_cast %101 : vector<1x8x128xf32> to vector<8x128xf32>
    %cst_25 = arith.constant dense<0.000000e+00> : vector<8x128xf32>
    %103 = tpu.matmul %96, %1, %cst_25 {dimension_numbers = #tpu.dot_dimension_numbers<[1], [0], [0], [1], [0, 0, 1, 1], [], []>} : vector<8x32xf32>, vector<32x128xf32>, vector<8x128xf32> -> vector<8x128xf32>
    %104 = arith.addf %102, %103 : vector<8x128xf32>
    %105 = vector.extract_strided_slice %100 {offsets = [0, 0], sizes = [8, 96], strides = [1, 1]} : vector<8x128xf32> to vector<8x96xf32>
    %106 = arith.negf %105 : vector<8x96xf32>
    %107 = math.exp %106 : vector<8x96xf32>
    %cst_26 = arith.constant 1.000000e+00 : f32
    %108 = vector.broadcast %cst_26 : f32 to vector<8x96xf32>
    %109 = arith.addf %108, %107 : vector<8x96xf32>
    %110 = arith.divf %108, %109 : vector<8x96xf32>
    %111 = vector.extract_strided_slice %110 {offsets = [0, 0], sizes = [8, 32], strides = [1, 1]} : vector<8x96xf32> to vector<8x32xf32>
    %112 = vector.extract_strided_slice %110 {offsets = [0, 32], sizes = [8, 32], strides = [1, 1]} : vector<8x96xf32> to vector<8x32xf32>
    %113 = vector.extract_strided_slice %110 {offsets = [0, 64], sizes = [8, 32], strides = [1, 1]} : vector<8x96xf32> to vector<8x32xf32>
    %114 = vector.extract_strided_slice %100 {offsets = [0, 96], sizes = [8, 32], strides = [1, 1]} : vector<8x128xf32> to vector<8x32xf32>
    %115 = math.tanh %114 : vector<8x32xf32>
    %116 = arith.mulf %112, %78 : vector<8x32xf32>
    %117 = arith.mulf %111, %115 : vector<8x32xf32>
    %118 = arith.addf %116, %117 : vector<8x32xf32>
    %119 = math.tanh %118 : vector<8x32xf32>
    %120 = arith.mulf %113, %119 : vector<8x32xf32>
    %121 = vector.extract_strided_slice %104 {offsets = [0, 0], sizes = [8, 96], strides = [1, 1]} : vector<8x128xf32> to vector<8x96xf32>
    %122 = arith.negf %121 : vector<8x96xf32>
    %123 = math.exp %122 : vector<8x96xf32>
    %cst_27 = arith.constant 1.000000e+00 : f32
    %124 = vector.broadcast %cst_27 : f32 to vector<8x96xf32>
    %125 = arith.addf %124, %123 : vector<8x96xf32>
    %126 = arith.divf %124, %125 : vector<8x96xf32>
    %127 = vector.extract_strided_slice %126 {offsets = [0, 0], sizes = [8, 32], strides = [1, 1]} : vector<8x96xf32> to vector<8x32xf32>
    %128 = vector.extract_strided_slice %126 {offsets = [0, 32], sizes = [8, 32], strides = [1, 1]} : vector<8x96xf32> to vector<8x32xf32>
    %129 = vector.extract_strided_slice %126 {offsets = [0, 64], sizes = [8, 32], strides = [1, 1]} : vector<8x96xf32> to vector<8x32xf32>
    %130 = vector.extract_strided_slice %104 {offsets = [0, 96], sizes = [8, 32], strides = [1, 1]} : vector<8x128xf32> to vector<8x32xf32>
    %131 = math.tanh %130 : vector<8x32xf32>
    %132 = arith.mulf %128, %94 : vector<8x32xf32>
    %133 = arith.mulf %127, %131 : vector<8x32xf32>
    %134 = arith.addf %132, %133 : vector<8x32xf32>
    %135 = math.tanh %134 : vector<8x32xf32>
    %136 = arith.mulf %129, %135 : vector<8x32xf32>
    %137 = vector.extract_strided_slice %9 {offsets = [3, 0, 0], sizes = [1, 8, 128], strides = [1, 1, 1]} : vector<8x8x128xf32> to vector<1x8x128xf32>
    %138 = vector.shape_cast %137 : vector<1x8x128xf32> to vector<8x128xf32>
    %cst_28 = arith.constant dense<0.000000e+00> : vector<8x128xf32>
    %139 = tpu.matmul %120, %0, %cst_28 {dimension_numbers = #tpu.dot_dimension_numbers<[1], [0], [0], [1], [0, 0, 1, 1], [], []>} : vector<8x32xf32>, vector<32x128xf32>, vector<8x128xf32> -> vector<8x128xf32>
    %140 = arith.addf %138, %139 : vector<8x128xf32>
    %141 = vector.extract_strided_slice %15 {offsets = [4, 0, 0], sizes = [1, 8, 128], strides = [1, 1, 1]} : vector<8x8x128xf32> to vector<1x8x128xf32>
    %142 = vector.shape_cast %141 : vector<1x8x128xf32> to vector<8x128xf32>
    %cst_29 = arith.constant dense<0.000000e+00> : vector<8x128xf32>
    %143 = tpu.matmul %136, %1, %cst_29 {dimension_numbers = #tpu.dot_dimension_numbers<[1], [0], [0], [1], [0, 0, 1, 1], [], []>} : vector<8x32xf32>, vector<32x128xf32>, vector<8x128xf32> -> vector<8x128xf32>
    %144 = arith.addf %142, %143 : vector<8x128xf32>
    %145 = vector.extract_strided_slice %140 {offsets = [0, 0], sizes = [8, 96], strides = [1, 1]} : vector<8x128xf32> to vector<8x96xf32>
    %146 = arith.negf %145 : vector<8x96xf32>
    %147 = math.exp %146 : vector<8x96xf32>
    %cst_30 = arith.constant 1.000000e+00 : f32
    %148 = vector.broadcast %cst_30 : f32 to vector<8x96xf32>
    %149 = arith.addf %148, %147 : vector<8x96xf32>
    %150 = arith.divf %148, %149 : vector<8x96xf32>
    %151 = vector.extract_strided_slice %150 {offsets = [0, 0], sizes = [8, 32], strides = [1, 1]} : vector<8x96xf32> to vector<8x32xf32>
    %152 = vector.extract_strided_slice %150 {offsets = [0, 32], sizes = [8, 32], strides = [1, 1]} : vector<8x96xf32> to vector<8x32xf32>
    %153 = vector.extract_strided_slice %150 {offsets = [0, 64], sizes = [8, 32], strides = [1, 1]} : vector<8x96xf32> to vector<8x32xf32>
    %154 = vector.extract_strided_slice %140 {offsets = [0, 96], sizes = [8, 32], strides = [1, 1]} : vector<8x128xf32> to vector<8x32xf32>
    %155 = math.tanh %154 : vector<8x32xf32>
    %156 = arith.mulf %152, %118 : vector<8x32xf32>
    %157 = arith.mulf %151, %155 : vector<8x32xf32>
    %158 = arith.addf %156, %157 : vector<8x32xf32>
    %159 = math.tanh %158 : vector<8x32xf32>
    %160 = arith.mulf %153, %159 : vector<8x32xf32>
    %161 = vector.extract_strided_slice %144 {offsets = [0, 0], sizes = [8, 96], strides = [1, 1]} : vector<8x128xf32> to vector<8x96xf32>
    %162 = arith.negf %161 : vector<8x96xf32>
    %163 = math.exp %162 : vector<8x96xf32>
    %cst_31 = arith.constant 1.000000e+00 : f32
    %164 = vector.broadcast %cst_31 : f32 to vector<8x96xf32>
    %165 = arith.addf %164, %163 : vector<8x96xf32>
    %166 = arith.divf %164, %165 : vector<8x96xf32>
    %167 = vector.extract_strided_slice %166 {offsets = [0, 0], sizes = [8, 32], strides = [1, 1]} : vector<8x96xf32> to vector<8x32xf32>
    %168 = vector.extract_strided_slice %166 {offsets = [0, 32], sizes = [8, 32], strides = [1, 1]} : vector<8x96xf32> to vector<8x32xf32>
    %169 = vector.extract_strided_slice %166 {offsets = [0, 64], sizes = [8, 32], strides = [1, 1]} : vector<8x96xf32> to vector<8x32xf32>
    %170 = vector.extract_strided_slice %144 {offsets = [0, 96], sizes = [8, 32], strides = [1, 1]} : vector<8x128xf32> to vector<8x32xf32>
    %171 = math.tanh %170 : vector<8x32xf32>
    %172 = arith.mulf %168, %134 : vector<8x32xf32>
    %173 = arith.mulf %167, %171 : vector<8x32xf32>
    %174 = arith.addf %172, %173 : vector<8x32xf32>
    %175 = math.tanh %174 : vector<8x32xf32>
    %176 = arith.mulf %169, %175 : vector<8x32xf32>
    %177 = vector.extract_strided_slice %9 {offsets = [4, 0, 0], sizes = [1, 8, 128], strides = [1, 1, 1]} : vector<8x8x128xf32> to vector<1x8x128xf32>
    %178 = vector.shape_cast %177 : vector<1x8x128xf32> to vector<8x128xf32>
    %cst_32 = arith.constant dense<0.000000e+00> : vector<8x128xf32>
    %179 = tpu.matmul %160, %0, %cst_32 {dimension_numbers = #tpu.dot_dimension_numbers<[1], [0], [0], [1], [0, 0, 1, 1], [], []>} : vector<8x32xf32>, vector<32x128xf32>, vector<8x128xf32> -> vector<8x128xf32>
    %180 = arith.addf %178, %179 : vector<8x128xf32>
    %181 = vector.extract_strided_slice %15 {offsets = [3, 0, 0], sizes = [1, 8, 128], strides = [1, 1, 1]} : vector<8x8x128xf32> to vector<1x8x128xf32>
    %182 = vector.shape_cast %181 : vector<1x8x128xf32> to vector<8x128xf32>
    %cst_33 = arith.constant dense<0.000000e+00> : vector<8x128xf32>
    %183 = tpu.matmul %176, %1, %cst_33 {dimension_numbers = #tpu.dot_dimension_numbers<[1], [0], [0], [1], [0, 0, 1, 1], [], []>} : vector<8x32xf32>, vector<32x128xf32>, vector<8x128xf32> -> vector<8x128xf32>
    %184 = arith.addf %182, %183 : vector<8x128xf32>
    %185 = vector.extract_strided_slice %180 {offsets = [0, 0], sizes = [8, 96], strides = [1, 1]} : vector<8x128xf32> to vector<8x96xf32>
    %186 = arith.negf %185 : vector<8x96xf32>
    %187 = math.exp %186 : vector<8x96xf32>
    %cst_34 = arith.constant 1.000000e+00 : f32
    %188 = vector.broadcast %cst_34 : f32 to vector<8x96xf32>
    %189 = arith.addf %188, %187 : vector<8x96xf32>
    %190 = arith.divf %188, %189 : vector<8x96xf32>
    %191 = vector.extract_strided_slice %190 {offsets = [0, 0], sizes = [8, 32], strides = [1, 1]} : vector<8x96xf32> to vector<8x32xf32>
    %192 = vector.extract_strided_slice %190 {offsets = [0, 32], sizes = [8, 32], strides = [1, 1]} : vector<8x96xf32> to vector<8x32xf32>
    %193 = vector.extract_strided_slice %190 {offsets = [0, 64], sizes = [8, 32], strides = [1, 1]} : vector<8x96xf32> to vector<8x32xf32>
    %194 = vector.extract_strided_slice %180 {offsets = [0, 96], sizes = [8, 32], strides = [1, 1]} : vector<8x128xf32> to vector<8x32xf32>
    %195 = math.tanh %194 : vector<8x32xf32>
    %196 = arith.mulf %192, %158 : vector<8x32xf32>
    %197 = arith.mulf %191, %195 : vector<8x32xf32>
    %198 = arith.addf %196, %197 : vector<8x32xf32>
    %199 = math.tanh %198 : vector<8x32xf32>
    %200 = arith.mulf %193, %199 : vector<8x32xf32>
    %201 = vector.extract_strided_slice %184 {offsets = [0, 0], sizes = [8, 96], strides = [1, 1]} : vector<8x128xf32> to vector<8x96xf32>
    %202 = arith.negf %201 : vector<8x96xf32>
    %203 = math.exp %202 : vector<8x96xf32>
    %cst_35 = arith.constant 1.000000e+00 : f32
    %204 = vector.broadcast %cst_35 : f32 to vector<8x96xf32>
    %205 = arith.addf %204, %203 : vector<8x96xf32>
    %206 = arith.divf %204, %205 : vector<8x96xf32>
    %207 = vector.extract_strided_slice %206 {offsets = [0, 0], sizes = [8, 32], strides = [1, 1]} : vector<8x96xf32> to vector<8x32xf32>
    %208 = vector.extract_strided_slice %206 {offsets = [0, 32], sizes = [8, 32], strides = [1, 1]} : vector<8x96xf32> to vector<8x32xf32>
    %209 = vector.extract_strided_slice %206 {offsets = [0, 64], sizes = [8, 32], strides = [1, 1]} : vector<8x96xf32> to vector<8x32xf32>
    %210 = vector.extract_strided_slice %184 {offsets = [0, 96], sizes = [8, 32], strides = [1, 1]} : vector<8x128xf32> to vector<8x32xf32>
    %211 = math.tanh %210 : vector<8x32xf32>
    %212 = arith.mulf %208, %174 : vector<8x32xf32>
    %213 = arith.mulf %207, %211 : vector<8x32xf32>
    %214 = arith.addf %212, %213 : vector<8x32xf32>
    %215 = math.tanh %214 : vector<8x32xf32>
    %216 = arith.mulf %209, %215 : vector<8x32xf32>
    %217 = vector.extract_strided_slice %9 {offsets = [5, 0, 0], sizes = [1, 8, 128], strides = [1, 1, 1]} : vector<8x8x128xf32> to vector<1x8x128xf32>
    %218 = vector.shape_cast %217 : vector<1x8x128xf32> to vector<8x128xf32>
    %cst_36 = arith.constant dense<0.000000e+00> : vector<8x128xf32>
    %219 = tpu.matmul %200, %0, %cst_36 {dimension_numbers = #tpu.dot_dimension_numbers<[1], [0], [0], [1], [0, 0, 1, 1], [], []>} : vector<8x32xf32>, vector<32x128xf32>, vector<8x128xf32> -> vector<8x128xf32>
    %220 = arith.addf %218, %219 : vector<8x128xf32>
    %221 = vector.extract_strided_slice %15 {offsets = [2, 0, 0], sizes = [1, 8, 128], strides = [1, 1, 1]} : vector<8x8x128xf32> to vector<1x8x128xf32>
    %222 = vector.shape_cast %221 : vector<1x8x128xf32> to vector<8x128xf32>
    %cst_37 = arith.constant dense<0.000000e+00> : vector<8x128xf32>
    %223 = tpu.matmul %216, %1, %cst_37 {dimension_numbers = #tpu.dot_dimension_numbers<[1], [0], [0], [1], [0, 0, 1, 1], [], []>} : vector<8x32xf32>, vector<32x128xf32>, vector<8x128xf32> -> vector<8x128xf32>
    %224 = arith.addf %222, %223 : vector<8x128xf32>
    %225 = vector.extract_strided_slice %220 {offsets = [0, 0], sizes = [8, 96], strides = [1, 1]} : vector<8x128xf32> to vector<8x96xf32>
    %226 = arith.negf %225 : vector<8x96xf32>
    %227 = math.exp %226 : vector<8x96xf32>
    %cst_38 = arith.constant 1.000000e+00 : f32
    %228 = vector.broadcast %cst_38 : f32 to vector<8x96xf32>
    %229 = arith.addf %228, %227 : vector<8x96xf32>
    %230 = arith.divf %228, %229 : vector<8x96xf32>
    %231 = vector.extract_strided_slice %230 {offsets = [0, 0], sizes = [8, 32], strides = [1, 1]} : vector<8x96xf32> to vector<8x32xf32>
    %232 = vector.extract_strided_slice %230 {offsets = [0, 32], sizes = [8, 32], strides = [1, 1]} : vector<8x96xf32> to vector<8x32xf32>
    %233 = vector.extract_strided_slice %230 {offsets = [0, 64], sizes = [8, 32], strides = [1, 1]} : vector<8x96xf32> to vector<8x32xf32>
    %234 = vector.extract_strided_slice %220 {offsets = [0, 96], sizes = [8, 32], strides = [1, 1]} : vector<8x128xf32> to vector<8x32xf32>
    %235 = math.tanh %234 : vector<8x32xf32>
    %236 = arith.mulf %232, %198 : vector<8x32xf32>
    %237 = arith.mulf %231, %235 : vector<8x32xf32>
    %238 = arith.addf %236, %237 : vector<8x32xf32>
    %239 = math.tanh %238 : vector<8x32xf32>
    %240 = arith.mulf %233, %239 : vector<8x32xf32>
    %241 = vector.extract_strided_slice %224 {offsets = [0, 0], sizes = [8, 96], strides = [1, 1]} : vector<8x128xf32> to vector<8x96xf32>
    %242 = arith.negf %241 : vector<8x96xf32>
    %243 = math.exp %242 : vector<8x96xf32>
    %cst_39 = arith.constant 1.000000e+00 : f32
    %244 = vector.broadcast %cst_39 : f32 to vector<8x96xf32>
    %245 = arith.addf %244, %243 : vector<8x96xf32>
    %246 = arith.divf %244, %245 : vector<8x96xf32>
    %247 = vector.extract_strided_slice %246 {offsets = [0, 0], sizes = [8, 32], strides = [1, 1]} : vector<8x96xf32> to vector<8x32xf32>
    %248 = vector.extract_strided_slice %246 {offsets = [0, 32], sizes = [8, 32], strides = [1, 1]} : vector<8x96xf32> to vector<8x32xf32>
    %249 = vector.extract_strided_slice %246 {offsets = [0, 64], sizes = [8, 32], strides = [1, 1]} : vector<8x96xf32> to vector<8x32xf32>
    %250 = vector.extract_strided_slice %224 {offsets = [0, 96], sizes = [8, 32], strides = [1, 1]} : vector<8x128xf32> to vector<8x32xf32>
    %251 = math.tanh %250 : vector<8x32xf32>
    %252 = arith.mulf %248, %214 : vector<8x32xf32>
    %253 = arith.mulf %247, %251 : vector<8x32xf32>
    %254 = arith.addf %252, %253 : vector<8x32xf32>
    %255 = math.tanh %254 : vector<8x32xf32>
    %256 = arith.mulf %249, %255 : vector<8x32xf32>
    %257 = vector.extract_strided_slice %9 {offsets = [6, 0, 0], sizes = [1, 8, 128], strides = [1, 1, 1]} : vector<8x8x128xf32> to vector<1x8x128xf32>
    %258 = vector.shape_cast %257 : vector<1x8x128xf32> to vector<8x128xf32>
    %cst_40 = arith.constant dense<0.000000e+00> : vector<8x128xf32>
    %259 = tpu.matmul %240, %0, %cst_40 {dimension_numbers = #tpu.dot_dimension_numbers<[1], [0], [0], [1], [0, 0, 1, 1], [], []>} : vector<8x32xf32>, vector<32x128xf32>, vector<8x128xf32> -> vector<8x128xf32>
    %260 = arith.addf %258, %259 : vector<8x128xf32>
    %261 = vector.extract_strided_slice %15 {offsets = [1, 0, 0], sizes = [1, 8, 128], strides = [1, 1, 1]} : vector<8x8x128xf32> to vector<1x8x128xf32>
    %262 = vector.shape_cast %261 : vector<1x8x128xf32> to vector<8x128xf32>
    %cst_41 = arith.constant dense<0.000000e+00> : vector<8x128xf32>
    %263 = tpu.matmul %256, %1, %cst_41 {dimension_numbers = #tpu.dot_dimension_numbers<[1], [0], [0], [1], [0, 0, 1, 1], [], []>} : vector<8x32xf32>, vector<32x128xf32>, vector<8x128xf32> -> vector<8x128xf32>
    %264 = arith.addf %262, %263 : vector<8x128xf32>
    %265 = vector.extract_strided_slice %260 {offsets = [0, 0], sizes = [8, 96], strides = [1, 1]} : vector<8x128xf32> to vector<8x96xf32>
    %266 = arith.negf %265 : vector<8x96xf32>
    %267 = math.exp %266 : vector<8x96xf32>
    %cst_42 = arith.constant 1.000000e+00 : f32
    %268 = vector.broadcast %cst_42 : f32 to vector<8x96xf32>
    %269 = arith.addf %268, %267 : vector<8x96xf32>
    %270 = arith.divf %268, %269 : vector<8x96xf32>
    %271 = vector.extract_strided_slice %270 {offsets = [0, 0], sizes = [8, 32], strides = [1, 1]} : vector<8x96xf32> to vector<8x32xf32>
    %272 = vector.extract_strided_slice %270 {offsets = [0, 32], sizes = [8, 32], strides = [1, 1]} : vector<8x96xf32> to vector<8x32xf32>
    %273 = vector.extract_strided_slice %270 {offsets = [0, 64], sizes = [8, 32], strides = [1, 1]} : vector<8x96xf32> to vector<8x32xf32>
    %274 = vector.extract_strided_slice %260 {offsets = [0, 96], sizes = [8, 32], strides = [1, 1]} : vector<8x128xf32> to vector<8x32xf32>
    %275 = math.tanh %274 : vector<8x32xf32>
    %276 = arith.mulf %272, %238 : vector<8x32xf32>
    %277 = arith.mulf %271, %275 : vector<8x32xf32>
    %278 = arith.addf %276, %277 : vector<8x32xf32>
    %279 = math.tanh %278 : vector<8x32xf32>
    %280 = arith.mulf %273, %279 : vector<8x32xf32>
    %281 = vector.extract_strided_slice %264 {offsets = [0, 0], sizes = [8, 96], strides = [1, 1]} : vector<8x128xf32> to vector<8x96xf32>
    %282 = arith.negf %281 : vector<8x96xf32>
    %283 = math.exp %282 : vector<8x96xf32>
    %cst_43 = arith.constant 1.000000e+00 : f32
    %284 = vector.broadcast %cst_43 : f32 to vector<8x96xf32>
    %285 = arith.addf %284, %283 : vector<8x96xf32>
    %286 = arith.divf %284, %285 : vector<8x96xf32>
    %287 = vector.extract_strided_slice %286 {offsets = [0, 0], sizes = [8, 32], strides = [1, 1]} : vector<8x96xf32> to vector<8x32xf32>
    %288 = vector.extract_strided_slice %286 {offsets = [0, 32], sizes = [8, 32], strides = [1, 1]} : vector<8x96xf32> to vector<8x32xf32>
    %289 = vector.extract_strided_slice %286 {offsets = [0, 64], sizes = [8, 32], strides = [1, 1]} : vector<8x96xf32> to vector<8x32xf32>
    %290 = vector.extract_strided_slice %264 {offsets = [0, 96], sizes = [8, 32], strides = [1, 1]} : vector<8x128xf32> to vector<8x32xf32>
    %291 = math.tanh %290 : vector<8x32xf32>
    %292 = arith.mulf %288, %254 : vector<8x32xf32>
    %293 = arith.mulf %287, %291 : vector<8x32xf32>
    %294 = arith.addf %292, %293 : vector<8x32xf32>
    %295 = math.tanh %294 : vector<8x32xf32>
    %296 = arith.mulf %289, %295 : vector<8x32xf32>
    %297 = vector.extract_strided_slice %9 {offsets = [7, 0, 0], sizes = [1, 8, 128], strides = [1, 1, 1]} : vector<8x8x128xf32> to vector<1x8x128xf32>
    %298 = vector.shape_cast %297 : vector<1x8x128xf32> to vector<8x128xf32>
    %cst_44 = arith.constant dense<0.000000e+00> : vector<8x128xf32>
    %299 = tpu.matmul %280, %0, %cst_44 {dimension_numbers = #tpu.dot_dimension_numbers<[1], [0], [0], [1], [0, 0, 1, 1], [], []>} : vector<8x32xf32>, vector<32x128xf32>, vector<8x128xf32> -> vector<8x128xf32>
    %300 = arith.addf %298, %299 : vector<8x128xf32>
    %301 = vector.extract_strided_slice %15 {offsets = [0, 0, 0], sizes = [1, 8, 128], strides = [1, 1, 1]} : vector<8x8x128xf32> to vector<1x8x128xf32>
    %302 = vector.shape_cast %301 : vector<1x8x128xf32> to vector<8x128xf32>
    %cst_45 = arith.constant dense<0.000000e+00> : vector<8x128xf32>
    %303 = tpu.matmul %296, %1, %cst_45 {dimension_numbers = #tpu.dot_dimension_numbers<[1], [0], [0], [1], [0, 0, 1, 1], [], []>} : vector<8x32xf32>, vector<32x128xf32>, vector<8x128xf32> -> vector<8x128xf32>
    %304 = arith.addf %302, %303 : vector<8x128xf32>
    %305 = vector.extract_strided_slice %300 {offsets = [0, 0], sizes = [8, 96], strides = [1, 1]} : vector<8x128xf32> to vector<8x96xf32>
    %306 = arith.negf %305 : vector<8x96xf32>
    %307 = math.exp %306 : vector<8x96xf32>
    %cst_46 = arith.constant 1.000000e+00 : f32
    %308 = vector.broadcast %cst_46 : f32 to vector<8x96xf32>
    %309 = arith.addf %308, %307 : vector<8x96xf32>
    %310 = arith.divf %308, %309 : vector<8x96xf32>
    %311 = vector.extract_strided_slice %310 {offsets = [0, 0], sizes = [8, 32], strides = [1, 1]} : vector<8x96xf32> to vector<8x32xf32>
    %312 = vector.extract_strided_slice %310 {offsets = [0, 32], sizes = [8, 32], strides = [1, 1]} : vector<8x96xf32> to vector<8x32xf32>
    %313 = vector.extract_strided_slice %310 {offsets = [0, 64], sizes = [8, 32], strides = [1, 1]} : vector<8x96xf32> to vector<8x32xf32>
    %314 = vector.extract_strided_slice %300 {offsets = [0, 96], sizes = [8, 32], strides = [1, 1]} : vector<8x128xf32> to vector<8x32xf32>
    %315 = math.tanh %314 : vector<8x32xf32>
    %316 = arith.mulf %312, %278 : vector<8x32xf32>
    %317 = arith.mulf %311, %315 : vector<8x32xf32>
    %318 = arith.addf %316, %317 : vector<8x32xf32>
    %319 = math.tanh %318 : vector<8x32xf32>
    %320 = arith.mulf %313, %319 : vector<8x32xf32>
    %321 = vector.extract_strided_slice %304 {offsets = [0, 0], sizes = [8, 96], strides = [1, 1]} : vector<8x128xf32> to vector<8x96xf32>
    %322 = arith.negf %321 : vector<8x96xf32>
    %323 = math.exp %322 : vector<8x96xf32>
    %cst_47 = arith.constant 1.000000e+00 : f32
    %324 = vector.broadcast %cst_47 : f32 to vector<8x96xf32>
    %325 = arith.addf %324, %323 : vector<8x96xf32>
    %326 = arith.divf %324, %325 : vector<8x96xf32>
    %327 = vector.extract_strided_slice %326 {offsets = [0, 0], sizes = [8, 32], strides = [1, 1]} : vector<8x96xf32> to vector<8x32xf32>
    %328 = vector.extract_strided_slice %326 {offsets = [0, 32], sizes = [8, 32], strides = [1, 1]} : vector<8x96xf32> to vector<8x32xf32>
    %329 = vector.extract_strided_slice %326 {offsets = [0, 64], sizes = [8, 32], strides = [1, 1]} : vector<8x96xf32> to vector<8x32xf32>
    %330 = vector.extract_strided_slice %304 {offsets = [0, 96], sizes = [8, 32], strides = [1, 1]} : vector<8x128xf32> to vector<8x32xf32>
    %331 = math.tanh %330 : vector<8x32xf32>
    %332 = arith.mulf %328, %294 : vector<8x32xf32>
    %333 = arith.mulf %327, %331 : vector<8x32xf32>
    %334 = arith.addf %332, %333 : vector<8x32xf32>
    %335 = math.tanh %334 : vector<8x32xf32>
    %336 = arith.mulf %329, %335 : vector<8x32xf32>
    %c0_48 = arith.constant 0 : index
    %c0_49 = arith.constant 0 : index
    %337 = vector.load %arg8[%c0_48, %c0_49] : memref<128x2xf32, #tpu.memory_space<vmem>>, vector<128x2xf32>
    %338 = vector.extract_strided_slice %337 {offsets = [0, 0], sizes = [32, 2], strides = [1, 1]} : vector<128x2xf32> to vector<32x2xf32>
    %cst_50 = arith.constant dense<0.000000e+00> : vector<8x2xf32>
    %339 = tpu.matmul %40, %338, %cst_50 {dimension_numbers = #tpu.dot_dimension_numbers<[1], [0], [0], [1], [0, 0, 1, 1], [], []>} : vector<8x32xf32>, vector<32x2xf32>, vector<8x2xf32> -> vector<8x2xf32>
    %340 = vector.extract_strided_slice %337 {offsets = [32, 0], sizes = [32, 2], strides = [1, 1]} : vector<128x2xf32> to vector<32x2xf32>
    %cst_51 = arith.constant dense<0.000000e+00> : vector<8x2xf32>
    %341 = tpu.matmul %336, %340, %cst_51 {dimension_numbers = #tpu.dot_dimension_numbers<[1], [0], [0], [1], [0, 0, 1, 1], [], []>} : vector<8x32xf32>, vector<32x2xf32>, vector<8x2xf32> -> vector<8x2xf32>
    %342 = arith.addf %339, %341 : vector<8x2xf32>
    %343 = vector.extract_strided_slice %337 {offsets = [64, 0], sizes = [32, 2], strides = [1, 1]} : vector<128x2xf32> to vector<32x2xf32>
    %cst_52 = arith.constant dense<0.000000e+00> : vector<8x2xf32>
    %344 = tpu.matmul %320, %343, %cst_52 {dimension_numbers = #tpu.dot_dimension_numbers<[1], [0], [0], [1], [0, 0, 1, 1], [], []>} : vector<8x32xf32>, vector<32x2xf32>, vector<8x2xf32> -> vector<8x2xf32>
    %345 = arith.addf %342, %344 : vector<8x2xf32>
    %346 = vector.extract_strided_slice %337 {offsets = [96, 0], sizes = [32, 2], strides = [1, 1]} : vector<128x2xf32> to vector<32x2xf32>
    %cst_53 = arith.constant dense<0.000000e+00> : vector<8x2xf32>
    %347 = tpu.matmul %56, %346, %cst_53 {dimension_numbers = #tpu.dot_dimension_numbers<[1], [0], [0], [1], [0, 0, 1, 1], [], []>} : vector<8x32xf32>, vector<32x2xf32>, vector<8x2xf32> -> vector<8x2xf32>
    %348 = arith.addf %345, %347 : vector<8x2xf32>
    %c0_54 = arith.constant 0 : index
    %c0_55 = arith.constant 0 : index
    %349 = vector.load %arg9[%c0_54, %c0_55] : memref<1x2xf32, #tpu.memory_space<vmem>>, vector<1x2xf32>
    %350 = vector.broadcast %349 : vector<1x2xf32> to vector<8x2xf32>
    %351 = arith.addf %348, %350 : vector<8x2xf32>
    %c0_56 = arith.constant 0 : index
    %c0_57 = arith.constant 0 : index
    %352 = vector.load %arg10[%c0_56, %c0_57] : memref<8x2xf32, #tpu.memory_space<vmem>>, vector<8x2xf32>
    tpu.vector_store %arg10[%c0_56, %c0_57], %351 {strides = array<i32>} : memref<8x2xf32, #tpu.memory_space<vmem>>, vector<8x2xf32>,
    return
  }
  func.func @transform_0(%arg0: i32) -> (i32, i32, i32) {
    %c0_i32 = arith.constant 0 : i32
    %c0_i32_0 = arith.constant 0 : i32
    %c0_i32_1 = arith.constant 0 : i32
    return %c0_i32, %arg0, %c0_i32_0 : i32, i32, i32
  }
  func.func @transform_1(%arg0: i32) -> (i32, i32) {
    %c0_i32 = arith.constant 0 : i32
    %c0_i32_0 = arith.constant 0 : i32
    %c0_i32_1 = arith.constant 0 : i32
    return %c0_i32, %c0_i32_0 : i32, i32
  }
  func.func @transform_2(%arg0: i32) -> (i32, i32) {
    %c0_i32 = arith.constant 0 : i32
    %c0_i32_0 = arith.constant 0 : i32
    %c0_i32_1 = arith.constant 0 : i32
    return %c0_i32, %c0_i32_0 : i32, i32
  }
  func.func @transform_3(%arg0: i32) -> (i32, i32) {
    %c0_i32 = arith.constant 0 : i32
    %c0_i32_0 = arith.constant 0 : i32
    %c0_i32_1 = arith.constant 0 : i32
    return %c0_i32, %c0_i32_0 : i32, i32
  }
  func.func @transform_4(%arg0: i32) -> (i32, i32) {
    %c0_i32 = arith.constant 0 : i32
    %c0_i32_0 = arith.constant 0 : i32
    %c0_i32_1 = arith.constant 0 : i32
    return %c0_i32, %c0_i32_0 : i32, i32
  }
  func.func @transform_5(%arg0: i32) -> (i32, i32) {
    %c0_i32 = arith.constant 0 : i32
    %c0_i32_0 = arith.constant 0 : i32
    %c0_i32_1 = arith.constant 0 : i32
    return %c0_i32, %c0_i32_0 : i32, i32
  }
  func.func @transform_6(%arg0: i32) -> (i32, i32) {
    %c0_i32 = arith.constant 0 : i32
    %c0_i32_0 = arith.constant 0 : i32
    %c0_i32_1 = arith.constant 0 : i32
    return %c0_i32, %c0_i32_0 : i32, i32
  }
  func.func @transform_7(%arg0: i32) -> (i32, i32) {
    %c0_i32 = arith.constant 0 : i32
    %c0_i32_0 = arith.constant 0 : i32
    %c0_i32_1 = arith.constant 0 : i32
    return %c0_i32, %c0_i32_0 : i32, i32
  }
  func.func @transform_8(%arg0: i32) -> (i32, i32) {
    %c0_i32 = arith.constant 0 : i32
    %c0_i32_0 = arith.constant 0 : i32
    %c0_i32_1 = arith.constant 0 : i32
    return %c0_i32, %c0_i32_0 : i32, i32
  }
  func.func @transform_9(%arg0: i32) -> (i32, i32) {
    %c0_i32 = arith.constant 0 : i32
    %c0_i32_0 = arith.constant 0 : i32
    return %arg0, %c0_i32 : i32, i32
  }
}

</mosaic_0001>

<bundles_post_ra>
// kernel: lstm_classifier_forward.1
= control target key start
LH: loop header
LB: loop body
LE: loop exit
PB: predicated region body
PF: predicated region fallthrough
CT: control target
= control target key end

     0   :  { %vm59_vm0 = vcmask 261120   ;;  %v2789_v12 = vmov 0.0   ;;  %vm2790_vm1 = vmmov 0   ;;  %vm2214_vm2 = vcmask 15360   ;;  %s3387_s1 = inlined_call_operand.vmem [shape: f32[32,128], index: 1, kind: input, shape index: {}]   ;;  %s3388_s4 = inlined_call_operand.vmem [shape: f32[32,128], index: 4, kind: input, shape index: {}]   ;;  %s3389_s0 = inlined_call_operand.vmem [shape: f32[8,8,32], index: 0, kind: input, shape index: {}]   ;;  %s3390_s5 = inlined_call_operand.vmem [shape: f32[32,128], index: 5, kind: input, shape index: {}]   ;;  %s3391_s2 = inlined_call_operand.vmem [shape: f32[32,128], index: 2, kind: input, shape index: {}]   ;;  %s3392_s3 = inlined_call_operand.vmem [shape: f32[1,128], index: 3, kind: input, shape index: {}]   ;;  %s3393_s6 = inlined_call_operand.vmem [shape: f32[1,128], index: 6, kind: input, shape index: {}]   ;;  %s3394_s7 = inlined_call_operand.vmem [shape: f32[128,2], index: 7, kind: input, shape index: {}]   ;;  %s3395_s8 = inlined_call_operand.vmem [shape: f32[1,2], index: 8, kind: input, shape index: {}]   ;;  %s3396_s9 = inlined_call_operand.vmem [shape: f32[8,2], index: 9, kind: output, shape index: {}]  }
   0x1   :  { %v51_v0 = vld [vmem:[%s3387_s1 + $0x18] sm:$0xff]  ;;  %v50_v2 = vld [vmem:[%s3387_s1 + $0x10] sm:$0xff]  ;;  %v49_v4 = vld [vmem:[%s3387_s1 + $0x8] sm:$0xff] }
   0x2   :  { %v192_v1 = vld [vmem:[%s3388_s4 + $0x18] sm:$0xff]  ;;  %2397 = vmatprep.subr.mxu0 %v51_v0  ;;  %v191_v3 = vld [vmem:[%s3388_s4 + $0x10] sm:$0xff]  ;;  %v190_v5 = vld [vmem:[%s3388_s4 + $0x8] sm:$0xff] }
   0x3   :  { %2417 = vmatprep.subr.mxu1 %v192_v1  ;;  %2398 = vmatpush3.msra.mxu0 %v51_v0  ;;  %v48_v6 = vld [vmem:[%s3387_s1] sm:$0xff]  ;;  %v41_v9 = vld [vmem:[%s3389_s0 + $0x8] sm:$0xff]  ;;  %v42_v10 = vld [vmem:[%s3389_s0 + $0x10] sm:$0xff] }
   0x4   :  { %2418 = vmatpush3.msra.mxu1 %v192_v1  ;;  %2399 = vmatprep.subr.mxu0 %v50_v2  ;;  %v189_v7 = vld [vmem:[%s3388_s4] sm:$0xff]  ;;  %v2881_v11 = vld [vmem:[%s3390_s5 + $0x18] sm:$0xff]  ;;  %v2895_v14 = vld [vmem:[%s3390_s5 + $0x10] sm:$0xff] }
   0x5   :  { %2419 = vmatprep.subr.mxu1 %v191_v3  ;;  %2400 = vmatpush3.msra.mxu0 %v50_v2  ;;  %v40_v8 = vld [vmem:[%s3389_s0] sm:$0xff]  ;;  %v43_v13 = vld [vmem:[%s3389_s0 + $0x18] sm:$0xff]  ;;  %v45_v17 = vld [vmem:[%s3389_s0 + $0x28] sm:$0xff] }
   0x6   :  { %2420 = vmatpush3.msra.mxu1 %v191_v3  ;;  %2401 = vmatprep.subr.mxu0 %v49_v4  ;;  %v44_v15 = vld [vmem:[%s3389_s0 + $0x20] sm:$0xff]  ;;  %v2905_v16 = vld [vmem:[%s3391_s2 + $0x18] sm:$0xff]  ;;  %v2919_v18 = vld [vmem:[%s3390_s5 + $0x8] sm:$0xff] }
   0x7   :  { %2421 = vmatprep.subr.mxu1 %v190_v5  ;;  %2402 = vmatpush3.msra.mxu0 %v49_v4  ;;  %v46_v19 = vld [vmem:[%s3389_s0 + $0x30] sm:$0xff]  ;;  %v47_v21 = vld [vmem:[%s3389_s0 + $0x38] sm:$0xff]  ;;  %v2943_v22 = vld [vmem:[%s3391_s2 + $0x8] sm:$0xff] }
   0x8   :  { %2422 = vmatpush3.msra.mxu1 %v190_v5  ;;  %2403 = vmatprep.subr.mxu0 %v48_v6  ;;  %v2929_v20 = vld [vmem:[%s3391_s2 + $0x10] sm:$0xff]  ;;  %v2948_v23 = vld [vmem:[%s3390_s5] sm:$0xff] }
   0x9   :  { %2423 = vmatprep.subr.mxu1 %v189_v7  ;;  %2404 = vmatpush3.msra.mxu0 %v48_v6  ;;  %v2957_v24 = vld [vmem:[%s3391_s2] sm:$0xff] }
   0xa   :  { %2405 = vmatprep.mubr.msk.f32.mxu0 %vm59_vm0, %v40_v8  ;;  %2424 = vmatpush3.msra.mxu1 %v189_v7  ;;  %v2220_v25 = vld [vmem:[%s3392_s3] ss:$0 sm:$0xff]  ;;  %s2791_s3 = smov 32  }
   0xb   :  { %2425 = vmatprep.mubr.msk.f32.mxu1 %vm59_vm0, %v40_v8  ;;  %2406 = vmatmul.mubr.msk.f32.vlgmr.msra.gmra.mxu0 %vm59_vm0, %v41_v9  ;;  %v2229_v26 = vld [vmem:[%s3393_s6] ss:$0 sm:$0xff]  ;;  %s2792_s6 = smov 64  }
   0xc   :  { %2426 = vmatmul.mubr.msk.f32.vlgmr.msra.gmra.mxu1 %vm59_vm0, %v41_v9  ;;  %2448 = vmatprep.subr.mxu1 %v2789_v12 }
   0xd   :  { %2408 = vmatprep.mubr.msk.f32.mxu0 %vm59_vm0, %v42_v10  ;;  %2449 = vmatpush3.msra.mxu1 %v2881_v11 }
   0xe   :  { %2428 = vmatprep.mubr.msk.f32.mxu1 %vm59_vm0, %v42_v10  ;;  %2450 = vmatprep.subr.mxu1 %v2789_v12 }
   0xf   :  { %2437 = vmatprep.subr.mxu0 %v2789_v12  ;;  %2409 = vmatmul.mubr.msk.f32.gmra.mxu0 %vm59_vm0, %v43_v13 }
  0x10   :  { %2429 = vmatmul.mubr.msk.f32.gmra.mxu1 %vm59_vm0, %v43_v13  ;;  %2411 = vmatprep.mubr.msk.f32.mxu0 %vm59_vm0, %v44_v15 }
  0x11   :  { %2451 = vmatpush3.msra.mxu1 %v2895_v14  ;;  %2431 = vmatprep.mubr.msk.f32.mxu1 %vm59_vm0, %v44_v15 }
  0x12   :  { %2438 = vmatpush3.msra.mxu0 %v2905_v16  ;;  %2452 = vmatprep.subr.mxu1 %v2789_v12 }
  0x13   :  { %2439 = vmatprep.subr.mxu0 %v2789_v12  ;;  %2412 = vmatmul.mubr.msk.f32.gmra.mxu0 %vm59_vm0, %v45_v17 }
  0x14   :  { %2432 = vmatmul.mubr.msk.f32.gmra.mxu1 %vm59_vm0, %v45_v17  ;;  %2414 = vmatprep.mubr.msk.f32.mxu0 %vm59_vm0, %v46_v19 }
  0x15   :  { %2453 = vmatpush3.msra.mxu1 %v2919_v18  ;;  %2434 = vmatprep.mubr.msk.f32.mxu1 %vm59_vm0, %v46_v19 }
  0x16   :  { %2440 = vmatpush3.msra.mxu0 %v2929_v20  ;;  %2454 = vmatprep.subr.mxu1 %v2789_v12 }
  0x17   :  { %2441 = vmatprep.subr.mxu0 %v2789_v12  ;;  %2415 = vmatmul.mubr.msk.f32.gmra.mxu0 %vm59_vm0, %v47_v21 }
  0x18   :  { %2435 = vmatmul.mubr.msk.f32.gmra.mxu1 %vm59_vm0, %v47_v21  ;;  %2442 = vmatpush3.msra.mxu0 %v2943_v22 }
  0x19   :  { %2455 = vmatpush3.msra.mxu1 %v2948_v23  ;;  %2443 = vmatprep.subr.mxu0 %v2789_v12 }
  0x1a   :  { %2445 = vmatprep.mubr.msk.f32.mxu0 %vm2790_vm1, %v2789_v12  ;;  %2444 = vmatpush3.msra.mxu0 %v2957_v24 }
  0x1b   :  { %2456 = vmatprep.mubr.msk.f32.mxu1 %vm2790_vm1, %v2789_v12  ;;  %2446 = vmatmul.mubr.f32.vlgmr.msra.gmra.mxu0 %v2789_v12 }
  0x1c   :  { %2457 = vmatmul.mubr.f32.vlgmr.msra.gmra.mxu1 %v2789_v12  ;;  %2470 = vmatprep.subr.mxu1 %v2789_v12 }
  0x1d   :  { %2459 = vmatprep.subr.mxu0 %v2789_v12  ;;  %2471 = vmatpush3.msra.mxu1 %v2881_v11 }
  0x1e   :  { %2460 = vmatpush3.msra.mxu0 %v2905_v16  ;;  %2472 = vmatprep.subr.mxu1 %v2789_v12 }
  0x1f   :  { %2461 = vmatprep.subr.mxu0 %v2789_v12  ;;  %2473 = vmatpush3.msra.mxu1 %v2895_v14 }
  0x20   :  { %2462 = vmatpush3.msra.mxu0 %v2929_v20  ;;  %2474 = vmatprep.subr.mxu1 %v2789_v12 }
  0x21   :  { %2478 = vmatprep.mubr.msk.f32.mxu1 %vm2790_vm1, %v2789_v12  ;;  %2475 = vmatpush3.msra.mxu1 %v2919_v18 }
  0x22   :  { %2463 = vmatprep.subr.mxu0 %v2789_v12  ;;  %2476 = vmatprep.subr.mxu1 %v2789_v12 }
  0x23   :  { %2464 = vmatpush3.msra.mxu0 %v2943_v22  ;;  %2477 = vmatpush3.msra.mxu1 %v2948_v23 }
  0x24   :  { %2465 = vmatprep.subr.mxu0 %v2789_v12  ;;  %2467 = vmatprep.mubr.msk.f32.mxu0 %vm2790_vm1, %v2789_v12 }
  0x25   :  { %2466 = vmatpush3.msra.mxu0 %v2957_v24  ;;  %2492 = vmatprep.subr.mxu1 %v2789_v12 }
  0x26   :  { %2481 = vmatprep.subr.mxu0 %v2789_v12 }
  0xcb   :  { %v2407_v27 = vpop.f32.mrf.mxu0 }
  0xcc   :  { %v2427_v28 = vpop.f32.mrf.mxu1  ;;  %v2997_v29 = vadd.f32 %v2407_v27, %v2220_v25 }
  0xcd   :  { %v2999_v30 = vadd.f32 %v2427_v28, %v2229_v26  ;;  %v150_v31 = vpop.f32.mrf.mxu0 }
  0xce   :  { %v266_v32 = vpop.f32.mrf.mxu1  ;;  %v151_v61 = vadd.f32 %v2220_v25, %v150_v31 }
  0xcf   :  { %v3001_v33 = vadd.f32 %v2229_v26, %v266_v32  ;;  %v2410_v34 = vpop.f32.mrf.mxu0 }
  0xd0   :  { %v2430_v35 = vpop.f32.mrf.mxu1  ;;  %v3003_v36 = vadd.f32 %v2410_v34, %v2220_v25 }
  0xd1   :  { %v3005_v37 = vadd.f32 %v2430_v35, %v2229_v26  ;;  %v160_v38 = vpop.f32.mrf.mxu0 }
  0xd2   :  { %v276_v39 = vpop.f32.mrf.mxu1  ;;  %v3007_v40 = vadd.f32 %v2220_v25, %v160_v38 }
  0xd3   :  { %v3009_v41 = vadd.f32 %v2229_v26, %v276_v39  ;;  %v2413_v42 = vpop.f32.mrf.mxu0 }
  0xd4   :  { %v2433_v43 = vpop.f32.mrf.mxu1  ;;  %v3011_v44 = vadd.f32 %v2413_v42, %v2220_v25 }
  0xd5   :  { %v3013_v45 = vadd.f32 %v2433_v43, %v2229_v26  ;;  %v170_v46 = vpop.f32.mrf.mxu0 }
  0xd6   :  { %v286_v47 = vpop.f32.mrf.mxu1  ;;  %v3015_v48 = vadd.f32 %v2220_v25, %v170_v46 }
  0xd7   :  { %v3017_v49 = vadd.f32 %v2229_v26, %v286_v47  ;;  %v2416_v50 = vpop.f32.mrf.mxu0 }
  0xd8   :  { %v2436_v51 = vpop.f32.mrf.mxu1  ;;  %v3019_v52 = vadd.f32 %v2416_v50, %v2220_v25 }
  0xd9   :  { %v180_v53 = vpop.f32.mrf.mxu0  ;;  %v302_v55 = vadd.f32 %v2436_v51, %v2229_v26 }
  0xda   :  { %v296_v54 = vpop.f32.mrf.mxu1  ;;  %v3021_v56 = vadd.f32 %v2220_v25, %v180_v53 }
  0xdb   :  { %v3023_v57 = vadd.f32 %v2229_v26, %v296_v54  ;;  %v374_v58 = vpop.f32.mrf.mxu0 }
  0xdc   :  { %v445_v59 = vpop.f32.mrf.mxu1  ;;  %v378_v0 = vadd.f32 %v374_v58, %v151_v61 }
  0xdd   :  { %v449_v60 = vadd.f32 %v445_v59, %v302_v55  ;;  %v2447_v63 = vpop.f32.mrf.mxu0 }
  0xde   :  { %v2458_v62 = vpop.f32.mrf.mxu1  ;;  %v2238_v4 = vmul.f32 -1.442695, %v378_v0 }
  0xdf   :  { %2661 = vtanh.f32 %v449_v60  ;;  %v2239_v3 = vmul.f32 -1.442695, %v449_v60 }
  0xe0   :  { %2663 = vtanh.f32 %v378_v0 }
  0xe1   :  { %2665 = vpow2.f32 %v2239_v3 }
  0xe2   :  { %2667 = vpow2.f32 %v2238_v4 }
  0xec   :  { %v2662_v1 = vpop.eup %2661 }
  0xed   :  { %483 = vrot.lane.b32.xlu0 %v2662_v1, %s2791_s3  ;;  %v2664_v2 = vpop.eup %2663 }
  0xee   :  { %v2666_v5 = vpop.eup %2665 }
  0xef   :  { %v477_v6 = vadd.f32 1.0, %v2666_v5  ;;  %v2668_v7 = vpop.eup %2667 }
  0xf0   :  { %v453_v8 = vadd.f32 1.0, %v2668_v7 }
  0xf1   :  { %459 = vrot.lane.b32.xlu0 %v2664_v2, %s2791_s3  ;;  %2669 = vrcp.f32 %v477_v6 }
  0xf2   :  { %2671 = vrcp.f32 %v453_v8 }
  0xfe   :  { %v2670_v9 = vpop.eup %2669 }
  0xff   :  { %v2672_v15 = vpop.eup %2671  ;;  %v481_v21 = vmul.f32 0.0, %v2670_v9 }
 0x100   :  { %v457_v27 = vmul.f32 0.0, %v2672_v15 }
 0x15f   :  { %v484_v10 = vpop.permute.xlu0 %483 }
 0x160   :  { %v486_v13 = vmul.f32 %v2670_v9, %v484_v10 }
 0x162   :  { %488 = vrot.lane.b32.xlu1 %v486_v13, %s2791_s3 }
 0x163   :  { %v460_v17 = vpop.permute.xlu0 %459 }
 0x164   :  { %v462_v19 = vmul.f32 %v2672_v15, %v460_v17 }
 0x166   :  { %464 = vrot.lane.b32.xlu1 %v462_v19, %s2791_s3 }
 0x1d4   :  { %v489_v25 = vpop.permute.xlu1 %488 }
 0x1d5   :  { %v3029_v26 = vadd.f32 %v489_v25, %v481_v21 }
 0x1d7   :  { %2673 = vtanh.f32 %v3029_v26 }
 0x1d8   :  { %v465_v28 = vpop.permute.xlu1 %464 }
 0x1d9   :  { %v3032_v31 = vadd.f32 %v465_v28, %v457_v27 }
 0x1db   :  { %2675 = vtanh.f32 %v3032_v31 }
 0x1e4   :  { %v2674_v32 = vpop.eup %2673 }
 0x1e5   :  { %494 = vrot.lane.b32.xlu0 %v2674_v32, %s2791_s3 }
 0x1e8   :  { %v2676_v34 = vpop.eup %2675 }
 0x1e9   :  { %470 = vrot.lane.b32.xlu1 %v2676_v34, %s2791_s3 }
 0x257   :  { %v495_v35 = vpop.permute.xlu0 %494 }
 0x258   :  { %v497_v38 = vmul.f32 %v2670_v9, %v495_v35 }
 0x25a   :  { %575 = vrot.lane.b32.xlu0 %v497_v38, %s2792_s6 }
 0x25b   :  { %v471_v39 = vpop.permute.xlu1 %470 }
 0x25c   :  { %v473_v42 = vmul.f32 %v2672_v15, %v471_v39 }
 0x25e   :  { %499 = vrot.lane.b32.xlu1 %v473_v42, %s2792_s6 }
 0x2cc   :  { %v3039_v43 = vpop.permute.xlu0 %575 }
 0x2cd   :  { %2479 = vmatmul.mubr.msk.f32.vlgmr.msra.gmra.mxu1 %vm59_vm0, %v3039_v43 }
 0x2ce   :  { %2493 = vmatpush3.msra.mxu1 %v2881_v11  ;;  %2500 = vmatprep.mubr.msk.f32.mxu1 %vm2790_vm1, %v2789_v12 }
 0x2cf   :  { %2494 = vmatprep.subr.mxu1 %v2789_v12 }
 0x2d0   :  { %v3047_v46 = vpop.permute.xlu1 %499  ;;  %2495 = vmatpush3.msra.mxu1 %v2895_v14 }
 0x2d1   :  { %2468 = vmatmul.mubr.msk.f32.vlgmr.msra.gmra.mxu0 %vm59_vm0, %v3047_v46  ;;  %2496 = vmatprep.subr.mxu1 %v2789_v12 }
 0x2d2   :  { %2482 = vmatpush3.msra.mxu0 %v2905_v16  ;;  %2497 = vmatpush3.msra.mxu1 %v2919_v18 }
 0x2d3   :  { %2483 = vmatprep.subr.mxu0 %v2789_v12  ;;  %2498 = vmatprep.subr.mxu1 %v2789_v12 }
 0x2d4   :  { %2499 = vmatpush3.msra.mxu1 %v2948_v23  ;;  %2484 = vmatpush3.msra.mxu0 %v2929_v20 }
 0x2d5   :  { %2485 = vmatprep.subr.mxu0 %v2789_v12  ;;  %2489 = vmatprep.mubr.msk.f32.mxu0 %vm2790_vm1, %v2789_v12 }
 0x2d6   :  { %2486 = vmatpush3.msra.mxu0 %v2943_v22  ;;  %2514 = vmatprep.subr.mxu1 %v2789_v12 }
 0x2d7   :  { %2487 = vmatprep.subr.mxu0 %v2789_v12 }
 0x2d8   :  { %2488 = vmatpush3.msra.mxu0 %v2957_v24 }
 0x2d9   :  { %2503 = vmatprep.subr.mxu0 %v2789_v12 }
 0x38d   :  { %v645_v47 = vpop.f32.mrf.mxu1 }
 0x38e   :  { %v649_v50 = vadd.f32 %v645_v47, %v3023_v57 }
 0x38f   :  { %v2480_v51 = vpop.f32.mrf.mxu1 }
 0x390   :  { %2677 = vtanh.f32 %v649_v50  ;;  %v2243_v60 = vmul.f32 -1.442695, %v649_v50 }
 0x391   :  { %v569_v53 = vpop.f32.mrf.mxu0 }
 0x392   :  { %v573_v54 = vadd.f32 %v569_v53, %v2997_v29 }
 0x393   :  { %v2469_v55 = vpop.f32.mrf.mxu0 }
 0x394   :  { %2679 = vtanh.f32 %v573_v54  ;;  %v2242_v61 = vmul.f32 -1.442695, %v573_v54 }
 0x395   :  { %2681 = vpow2.f32 %v2243_v60 }
 0x396   :  { %2683 = vpow2.f32 %v2242_v61 }
 0x39d   :  { %v2678_v58 = vpop.eup %2677 }
 0x39e   :  { %683 = vrot.lane.b32.xlu0 %v2678_v58, %s2791_s3 }
 0x3a1   :  { %v2680_v59 = vpop.eup %2679 }
 0x3a2   :  { %659 = vrot.lane.b32.xlu1 %v2680_v59, %s2791_s3  ;;  %v2682_v62 = vpop.eup %2681 }
 0x3a3   :  { %v677_v63 = vadd.f32 1.0, %v2682_v62  ;;  %v2684_v57 = vpop.eup %2683 }
 0x3a4   :  { %v653_v0 = vadd.f32 1.0, %v2684_v57 }
 0x3a5   :  { %2685 = vrcp.f32 %v677_v63 }
 0x3a6   :  { %2687 = vrcp.f32 %v653_v0 }
 0x3b2   :  { %v2686_v1 = vpop.eup %2685 }
 0x3b3   :  { %v2688_v3 = vpop.eup %2687  ;;  %v681_v6 = vmul.f32 %v2686_v1, %v3029_v26 }
 0x3b4   :  { %v657_v9 = vmul.f32 %v2688_v3, %v3032_v31 }
 0x410   :  { %v684_v29 = vpop.permute.xlu0 %683 }
 0x411   :  { %v686_v2 = vmul.f32 %v2686_v1, %v684_v29 }
 0x413   :  { %688 = vrot.lane.b32.xlu0 %v686_v2, %s2791_s3 }
 0x414   :  { %v660_v4 = vpop.permute.xlu1 %659 }
 0x415   :  { %v662_v5 = vmul.f32 %v2688_v3, %v660_v4 }
 0x417   :  { %664 = vrot.lane.b32.xlu1 %v662_v5, %s2791_s3 }
 0x485   :  { %v689_v7 = vpop.permute.xlu0 %688 }
 0x486   :  { %v3074_v8 = vadd.f32 %v689_v7, %v681_v6 }
 0x488   :  { %2689 = vtanh.f32 %v3074_v8 }
 0x489   :  { %v665_v10 = vpop.permute.xlu1 %664 }
 0x48a   :  { %v3078_v13 = vadd.f32 %v665_v10, %v657_v9 }
 0x48c   :  { %2691 = vtanh.f32 %v3078_v13 }
 0x495   :  { %v2690_v15 = vpop.eup %2689 }
 0x496   :  { %694 = vrot.lane.b32.xlu0 %v2690_v15, %s2791_s3 }
 0x499   :  { %v2692_v17 = vpop.eup %2691 }
 0x49a   :  { %670 = vrot.lane.b32.xlu1 %v2692_v17, %s2791_s3 }
 0x508   :  { %v695_v19 = vpop.permute.xlu0 %694 }
 0x509   :  { %v697_v21 = vmul.f32 %v2686_v1, %v695_v19 }
 0x50b   :  { %775 = vrot.lane.b32.xlu0 %v697_v21, %s2792_s6 }
 0x50c   :  { %v671_v25 = vpop.permute.xlu1 %670 }
 0x50d   :  { %v673_v26 = vmul.f32 %v2688_v3, %v671_v25 }
 0x50f   :  { %699 = vrot.lane.b32.xlu1 %v673_v26, %s2792_s6 }
 0x57d   :  { %v776_v27 = vpop.permute.xlu0 %775 }
 0x57e   :  { %2501 = vmatmul.mubr.msk.f32.vlgmr.msra.gmra.mxu1 %vm59_vm0, %v776_v27 }
 0x57f   :  { %2515 = vmatpush3.msra.mxu1 %v2881_v11  ;;  %2522 = vmatprep.mubr.msk.f32.mxu1 %vm2790_vm1, %v2789_v12 }
 0x580   :  { %2516 = vmatprep.subr.mxu1 %v2789_v12 }
 0x581   :  { %v700_v28 = vpop.permute.xlu1 %699  ;;  %2517 = vmatpush3.msra.mxu1 %v2895_v14 }
 0x582   :  { %2490 = vmatmul.mubr.msk.f32.vlgmr.msra.gmra.mxu0 %vm59_vm0, %v700_v28  ;;  %2518 = vmatprep.subr.mxu1 %v2789_v12 }
 0x583   :  { %2504 = vmatpush3.msra.mxu0 %v2905_v16  ;;  %2519 = vmatpush3.msra.mxu1 %v2919_v18 }
 0x584   :  { %2505 = vmatprep.subr.mxu0 %v2789_v12  ;;  %2520 = vmatprep.subr.mxu1 %v2789_v12 }
 0x585   :  { %2521 = vmatpush3.msra.mxu1 %v2948_v23  ;;  %2506 = vmatpush3.msra.mxu0 %v2929_v20 }
 0x586   :  { %2507 = vmatprep.subr.mxu0 %v2789_v12  ;;  %2511 = vmatprep.mubr.msk.f32.mxu0 %vm2790_vm1, %v2789_v12 }
 0x587   :  { %2508 = vmatpush3.msra.mxu0 %v2943_v22  ;;  %2536 = vmatprep.subr.mxu1 %v2789_v12 }
 0x588   :  { %2509 = vmatprep.subr.mxu0 %v2789_v12 }
 0x589   :  { %2510 = vmatpush3.msra.mxu0 %v2957_v24 }
 0x58a   :  { %2525 = vmatprep.subr.mxu0 %v2789_v12 }
 0x63e   :  { %v845_v31 = vpop.f32.mrf.mxu1 }
 0x63f   :  { %v849_v32 = vadd.f32 %v845_v31, %v3013_v45 }
 0x640   :  { %v2502_v34 = vpop.f32.mrf.mxu1 }
 0x641   :  { %2693 = vtanh.f32 %v849_v32  ;;  %v2247_v50 = vmul.f32 -1.442695, %v849_v32 }
 0x642   :  { %v769_v35 = vpop.f32.mrf.mxu0 }
 0x643   :  { %v773_v38 = vadd.f32 %v769_v35, %v3007_v40 }
 0x644   :  { %v2491_v39 = vpop.f32.mrf.mxu0 }
 0x645   :  { %2695 = vtanh.f32 %v773_v38  ;;  %v2246_v51 = vmul.f32 -1.442695, %v773_v38 }
 0x646   :  { %2697 = vpow2.f32 %v2247_v50 }
 0x647   :  { %2699 = vpow2.f32 %v2246_v51 }
 0x64e   :  { %v2694_v42 = vpop.eup %2693 }
 0x64f   :  { %883 = vrot.lane.b32.xlu0 %v2694_v42, %s2791_s3 }
 0x652   :  { %v2696_v47 = vpop.eup %2695 }
 0x653   :  { %859 = vrot.lane.b32.xlu1 %v2696_v47, %s2791_s3  ;;  %v2698_v53 = vpop.eup %2697 }
 0x654   :  { %v877_v54 = vadd.f32 1.0, %v2698_v53  ;;  %v2700_v45 = vpop.eup %2699 }
 0x655   :  { %v853_v55 = vadd.f32 1.0, %v2700_v45 }
 0x656   :  { %2701 = vrcp.f32 %v877_v54 }
 0x657   :  { %2703 = vrcp.f32 %v853_v55 }
 0x663   :  { %v2702_v58 = vpop.eup %2701 }
 0x664   :  { %v2704_v60 = vpop.eup %2703  ;;  %v881_v63 = vmul.f32 %v2702_v58, %v3074_v8 }
 0x665   :  { %v857_v1 = vmul.f32 %v2704_v60, %v3078_v13 }
 0x6c1   :  { %v884_v40 = vpop.permute.xlu0 %883 }
 0x6c2   :  { %v886_v59 = vmul.f32 %v2702_v58, %v884_v40 }
 0x6c4   :  { %888 = vrot.lane.b32.xlu0 %v886_v59, %s2791_s3 }
 0x6c5   :  { %v860_v61 = vpop.permute.xlu1 %859 }
 0x6c6   :  { %v862_v62 = vmul.f32 %v2704_v60, %v860_v61 }
 0x6c8   :  { %864 = vrot.lane.b32.xlu1 %v862_v62, %s2791_s3 }
 0x736   :  { %v889_v57 = vpop.permute.xlu0 %888 }
 0x737   :  { %v3114_v0 = vadd.f32 %v889_v57, %v881_v63 }
 0x739   :  { %2705 = vtanh.f32 %v3114_v0 }
 0x73a   :  { %v865_v29 = vpop.permute.xlu1 %864 }
 0x73b   :  { %v3118_v2 = vadd.f32 %v865_v29, %v857_v1 }
 0x73d   :  { %2707 = vtanh.f32 %v3118_v2 }
 0x746   :  { %v2706_v3 = vpop.eup %2705 }
 0x747   :  { %894 = vrot.lane.b32.xlu0 %v2706_v3, %s2791_s3 }
 0x74a   :  { %v2708_v4 = vpop.eup %2707 }
 0x74b   :  { %870 = vrot.lane.b32.xlu1 %v2708_v4, %s2791_s3 }
 0x7b9   :  { %v895_v5 = vpop.permute.xlu0 %894 }
 0x7ba   :  { %v897_v6 = vmul.f32 %v2702_v58, %v895_v5 }
 0x7bc   :  { %975 = vrot.lane.b32.xlu0 %v897_v6, %s2792_s6 }
 0x7bd   :  { %v871_v7 = vpop.permute.xlu1 %870 }
 0x7be   :  { %v873_v8 = vmul.f32 %v2704_v60, %v871_v7 }
 0x7c0   :  { %899 = vrot.lane.b32.xlu1 %v873_v8, %s2792_s6 }
 0x82e   :  { %v976_v9 = vpop.permute.xlu0 %975 }
 0x82f   :  { %2523 = vmatmul.mubr.msk.f32.vlgmr.msra.gmra.mxu1 %vm59_vm0, %v976_v9 }
 0x830   :  { %2537 = vmatpush3.msra.mxu1 %v2881_v11  ;;  %2544 = vmatprep.mubr.msk.f32.mxu1 %vm2790_vm1, %v2789_v12 }
 0x831   :  { %2538 = vmatprep.subr.mxu1 %v2789_v12 }
 0x832   :  { %v900_v10 = vpop.permute.xlu1 %899  ;;  %2539 = vmatpush3.msra.mxu1 %v2895_v14 }
 0x833   :  { %2512 = vmatmul.mubr.msk.f32.vlgmr.msra.gmra.mxu0 %vm59_vm0, %v900_v10  ;;  %2540 = vmatprep.subr.mxu1 %v2789_v12 }
 0x834   :  { %2526 = vmatpush3.msra.mxu0 %v2905_v16  ;;  %2541 = vmatpush3.msra.mxu1 %v2919_v18 }
 0x835   :  { %2527 = vmatprep.subr.mxu0 %v2789_v12  ;;  %2542 = vmatprep.subr.mxu1 %v2789_v12 }
 0x836   :  { %2543 = vmatpush3.msra.mxu1 %v2948_v23  ;;  %2528 = vmatpush3.msra.mxu0 %v2929_v20 }
 0x837   :  { %2529 = vmatprep.subr.mxu0 %v2789_v12  ;;  %2533 = vmatprep.mubr.msk.f32.mxu0 %vm2790_vm1, %v2789_v12 }
 0x838   :  { %2530 = vmatpush3.msra.mxu0 %v2943_v22  ;;  %2558 = vmatprep.subr.mxu1 %v2789_v12 }
 0x839   :  { %2531 = vmatprep.subr.mxu0 %v2789_v12 }
 0x83a   :  { %2532 = vmatpush3.msra.mxu0 %v2957_v24 }
 0x83b   :  { %2547 = vmatprep.subr.mxu0 %v2789_v12 }
 0x8ef   :  { %v1045_v13 = vpop.f32.mrf.mxu1 }
 0x8f0   :  { %v1049_v15 = vadd.f32 %v1045_v13, %v3017_v49 }
 0x8f1   :  { %v2524_v17 = vpop.f32.mrf.mxu1 }
 0x8f2   :  { %2709 = vtanh.f32 %v1049_v15  ;;  %v2251_v28 = vmul.f32 -1.442695, %v1049_v15 }
 0x8f3   :  { %v969_v19 = vpop.f32.mrf.mxu0 }
 0x8f4   :  { %v973_v21 = vadd.f32 %v969_v19, %v3003_v36 }
 0x8f5   :  { %v2513_v25 = vpop.f32.mrf.mxu0 }
 0x8f6   :  { %2711 = vtanh.f32 %v973_v21  ;;  %v2250_v31 = vmul.f32 -1.442695, %v973_v21 }
 0x8f7   :  { %2713 = vpow2.f32 %v2251_v28 }
 0x8f8   :  { %2715 = vpow2.f32 %v2250_v31 }
 0x8ff   :  { %v2710_v26 = vpop.eup %2709 }
 0x900   :  { %1083 = vrot.lane.b32.xlu0 %v2710_v26, %s2791_s3 }
 0x903   :  { %v2712_v27 = vpop.eup %2711 }
 0x904   :  { %1059 = vrot.lane.b32.xlu1 %v2712_v27, %s2791_s3  ;;  %v2714_v32 = vpop.eup %2713 }
 0x905   :  { %v1077_v34 = vadd.f32 1.0, %v2714_v32  ;;  %v2716_v49 = vpop.eup %2715 }
 0x906   :  { %v1053_v35 = vadd.f32 1.0, %v2716_v49 }
 0x907   :  { %2717 = vrcp.f32 %v1077_v34 }
 0x908   :  { %2719 = vrcp.f32 %v1053_v35 }
 0x914   :  { %v2718_v38 = vpop.eup %2717 }
 0x915   :  { %v2720_v42 = vpop.eup %2719  ;;  %v1081_v51 = vmul.f32 %v2718_v38, %v3114_v0 }
 0x916   :  { %v1057_v45 = vmul.f32 %v2720_v42, %v3118_v2 }
 0x972   :  { %v1084_v36 = vpop.permute.xlu0 %1083 }
 0x973   :  { %v1086_v39 = vmul.f32 %v2718_v38, %v1084_v36 }
 0x975   :  { %1088 = vrot.lane.b32.xlu0 %v1086_v39, %s2791_s3 }
 0x976   :  { %v1060_v47 = vpop.permute.xlu1 %1059 }
 0x977   :  { %v1062_v50 = vmul.f32 %v2720_v42, %v1060_v47 }
 0x979   :  { %1064 = vrot.lane.b32.xlu1 %v1062_v50, %s2791_s3 }
 0x9e7   :  { %v1089_v53 = vpop.permute.xlu0 %1088 }
 0x9e8   :  { %v3154_v54 = vadd.f32 %v1089_v53, %v1081_v51 }
 0x9ea   :  { %2721 = vtanh.f32 %v3154_v54 }
 0x9eb   :  { %v1065_v55 = vpop.permute.xlu1 %1064 }
 0x9ec   :  { %v3158_v58 = vadd.f32 %v1065_v55, %v1057_v45 }
 0x9ee   :  { %2723 = vtanh.f32 %v3158_v58 }
 0x9f7   :  { %v2722_v40 = vpop.eup %2721 }
 0x9f8   :  { %1094 = vrot.lane.b32.xlu0 %v2722_v40, %s2791_s3 }
 0x9fb   :  { %v2724_v59 = vpop.eup %2723 }
 0x9fc   :  { %1070 = vrot.lane.b32.xlu1 %v2724_v59, %s2791_s3 }
 0xa6a   :  { %v1095_v60 = vpop.permute.xlu0 %1094 }
 0xa6b   :  { %v1097_v61 = vmul.f32 %v2718_v38, %v1095_v60 }
 0xa6d   :  { %1175 = vrot.lane.b32.xlu0 %v1097_v61, %s2792_s6 }
 0xa6e   :  { %v1071_v62 = vpop.permute.xlu1 %1070 }
 0xa6f   :  { %v1073_v63 = vmul.f32 %v2720_v42, %v1071_v62 }
 0xa71   :  { %1099 = vrot.lane.b32.xlu1 %v1073_v63, %s2792_s6 }
 0xadf   :  { %v1176_v57 = vpop.permute.xlu0 %1175 }
 0xae0   :  { %2545 = vmatmul.mubr.msk.f32.vlgmr.msra.gmra.mxu1 %vm59_vm0, %v1176_v57 }
 0xae1   :  { %2559 = vmatpush3.msra.mxu1 %v2881_v11  ;;  %2566 = vmatprep.mubr.msk.f32.mxu1 %vm2790_vm1, %v2789_v12 }
 0xae2   :  { %2560 = vmatprep.subr.mxu1 %v2789_v12 }
 0xae3   :  { %v1100_v0 = vpop.permute.xlu1 %1099  ;;  %2561 = vmatpush3.msra.mxu1 %v2895_v14 }
 0xae4   :  { %2534 = vmatmul.mubr.msk.f32.vlgmr.msra.gmra.mxu0 %vm59_vm0, %v1100_v0  ;;  %2562 = vmatprep.subr.mxu1 %v2789_v12 }
 0xae5   :  { %2548 = vmatpush3.msra.mxu0 %v2905_v16  ;;  %2563 = vmatpush3.msra.mxu1 %v2919_v18 }
 0xae6   :  { %2549 = vmatprep.subr.mxu0 %v2789_v12  ;;  %2564 = vmatprep.subr.mxu1 %v2789_v12 }
 0xae7   :  { %2565 = vmatpush3.msra.mxu1 %v2948_v23  ;;  %2550 = vmatpush3.msra.mxu0 %v2929_v20 }
 0xae8   :  { %2551 = vmatprep.subr.mxu0 %v2789_v12  ;;  %2555 = vmatprep.mubr.msk.f32.mxu0 %vm2790_vm1, %v2789_v12 }
 0xae9   :  { %2552 = vmatpush3.msra.mxu0 %v2943_v22  ;;  %2580 = vmatprep.subr.mxu1 %v2789_v12 }
 0xaea   :  { %2553 = vmatprep.subr.mxu0 %v2789_v12 }
 0xaeb   :  { %2554 = vmatpush3.msra.mxu0 %v2957_v24 }
 0xaec   :  { %2569 = vmatprep.subr.mxu0 %v2789_v12 }
 0xba0   :  { %v1245_v1 = vpop.f32.mrf.mxu1 }
 0xba1   :  { %v1249_v29 = vadd.f32 %v1245_v1, %v3005_v37 }
 0xba2   :  { %v2546_v2 = vpop.f32.mrf.mxu1 }
 0xba3   :  { %2725 = vtanh.f32 %v1249_v29  ;;  %v2255_v8 = vmul.f32 -1.442695, %v1249_v29 }
 0xba4   :  { %v1169_v3 = vpop.f32.mrf.mxu0 }
 0xba5   :  { %v1173_v4 = vadd.f32 %v1169_v3, %v3015_v48 }
 0xba6   :  { %v2535_v5 = vpop.f32.mrf.mxu0 }
 0xba7   :  { %2727 = vtanh.f32 %v1173_v4  ;;  %v2254_v9 = vmul.f32 -1.442695, %v1173_v4 }
 0xba8   :  { %2729 = vpow2.f32 %v2255_v8 }
 0xba9   :  { %2731 = vpow2.f32 %v2254_v9 }
 0xbb0   :  { %v2726_v6 = vpop.eup %2725 }
 0xbb1   :  { %1283 = vrot.lane.b32.xlu0 %v2726_v6, %s2791_s3 }
 0xbb4   :  { %v2728_v7 = vpop.eup %2727 }
 0xbb5   :  { %1259 = vrot.lane.b32.xlu1 %v2728_v7, %s2791_s3  ;;  %v2730_v10 = vpop.eup %2729 }
 0xbb6   :  { %v1277_v13 = vadd.f32 1.0, %v2730_v10  ;;  %v2732_v37 = vpop.eup %2731 }
 0xbb7   :  { %v1253_v15 = vadd.f32 1.0, %v2732_v37 }
 0xbb8   :  { %2733 = vrcp.f32 %v1277_v13 }
 0xbb9   :  { %2735 = vrcp.f32 %v1253_v15 }
 0xbc5   :  { %v2734_v17 = vpop.eup %2733 }
 0xbc6   :  { %v2736_v21 = vpop.eup %2735  ;;  %v1281_v27 = vmul.f32 %v2734_v17, %v3154_v54 }
 0xbc7   :  { %v1257_v32 = vmul.f32 %v2736_v21, %v3158_v58 }
 0xc23   :  { %v1284_v48 = vpop.permute.xlu0 %1283 }
 0xc24   :  { %v1286_v19 = vmul.f32 %v2734_v17, %v1284_v48 }
 0xc26   :  { %1288 = vrot.lane.b32.xlu0 %v1286_v19, %s2791_s3 }
 0xc27   :  { %v1260_v25 = vpop.permute.xlu1 %1259 }
 0xc28   :  { %v1262_v26 = vmul.f32 %v2736_v21, %v1260_v25 }
 0xc2a   :  { %1264 = vrot.lane.b32.xlu1 %v1262_v26, %s2791_s3 }
 0xc98   :  { %v1289_v28 = vpop.permute.xlu0 %1288 }
 0xc99   :  { %v3194_v31 = vadd.f32 %v1289_v28, %v1281_v27 }
 0xc9b   :  { %2737 = vtanh.f32 %v3194_v31 }
 0xc9c   :  { %v1265_v34 = vpop.permute.xlu1 %1264 }
 0xc9d   :  { %v3198_v49 = vadd.f32 %v1265_v34, %v1257_v32 }
 0xc9f   :  { %2739 = vtanh.f32 %v3198_v49 }
 0xca8   :  { %v2738_v35 = vpop.eup %2737 }
 0xca9   :  { %1294 = vrot.lane.b32.xlu0 %v2738_v35, %s2791_s3 }
 0xcac   :  { %v2740_v38 = vpop.eup %2739 }
 0xcad   :  { %1270 = vrot.lane.b32.xlu1 %v2740_v38, %s2791_s3 }
 0xd1b   :  { %v1295_v36 = vpop.permute.xlu0 %1294 }
 0xd1c   :  { %v1297_v39 = vmul.f32 %v2734_v17, %v1295_v36 }
 0xd1e   :  { %1375 = vrot.lane.b32.xlu0 %v1297_v39, %s2792_s6 }
 0xd1f   :  { %v1271_v42 = vpop.permute.xlu1 %1270 }
 0xd20   :  { %v1273_v47 = vmul.f32 %v2736_v21, %v1271_v42 }
 0xd22   :  { %1299 = vrot.lane.b32.xlu1 %v1273_v47, %s2792_s6 }
 0xd90   :  { %v1376_v50 = vpop.permute.xlu0 %1375 }
 0xd91   :  { %2567 = vmatmul.mubr.msk.f32.vlgmr.msra.gmra.mxu1 %vm59_vm0, %v1376_v50 }
 0xd92   :  { %2581 = vmatpush3.msra.mxu1 %v2881_v11  ;;  %2588 = vmatprep.mubr.msk.f32.mxu1 %vm2790_vm1, %v2789_v12 }
 0xd93   :  { %2582 = vmatprep.subr.mxu1 %v2789_v12 }
 0xd94   :  { %v1300_v51 = vpop.permute.xlu1 %1299  ;;  %2583 = vmatpush3.msra.mxu1 %v2895_v14 }
 0xd95   :  { %2556 = vmatmul.mubr.msk.f32.vlgmr.msra.gmra.mxu0 %vm59_vm0, %v1300_v51  ;;  %2584 = vmatprep.subr.mxu1 %v2789_v12 }
 0xd96   :  { %2570 = vmatpush3.msra.mxu0 %v2905_v16  ;;  %2585 = vmatpush3.msra.mxu1 %v2919_v18 }
 0xd97   :  { %2571 = vmatprep.subr.mxu0 %v2789_v12  ;;  %2586 = vmatprep.subr.mxu1 %v2789_v12 }
 0xd98   :  { %2587 = vmatpush3.msra.mxu1 %v2948_v23  ;;  %2572 = vmatpush3.msra.mxu0 %v2929_v20 }
 0xd99   :  { %2573 = vmatprep.subr.mxu0 %v2789_v12  ;;  %2577 = vmatprep.mubr.msk.f32.mxu0 %vm2790_vm1, %v2789_v12 }
 0xd9a   :  { %2574 = vmatpush3.msra.mxu0 %v2943_v22  ;;  %2602 = vmatprep.subr.mxu1 %v2789_v12 }
 0xd9b   :  { %2575 = vmatprep.subr.mxu0 %v2789_v12 }
 0xd9c   :  { %2576 = vmatpush3.msra.mxu0 %v2957_v24 }
 0xd9d   :  { %2591 = vmatprep.subr.mxu0 %v2789_v12 }
 0xe51   :  { %v1445_v53 = vpop.f32.mrf.mxu1 }
 0xe52   :  { %v1449_v54 = vadd.f32 %v1445_v53, %v3009_v41 }
 0xe53   :  { %v2568_v45 = vpop.f32.mrf.mxu1 }
 0xe54   :  { %2741 = vtanh.f32 %v1449_v54  ;;  %v2259_v61 = vmul.f32 -1.442695, %v1449_v54 }
 0xe55   :  { %v1369_v55 = vpop.f32.mrf.mxu0 }
 0xe56   :  { %v1373_v58 = vadd.f32 %v1369_v55, %v3011_v44 }
 0xe57   :  { %v2557_v40 = vpop.f32.mrf.mxu0 }
 0xe58   :  { %2743 = vtanh.f32 %v1373_v58  ;;  %v2258_v62 = vmul.f32 -1.442695, %v1373_v58 }
 0xe59   :  { %2745 = vpow2.f32 %v2259_v61 }
 0xe5a   :  { %2747 = vpow2.f32 %v2258_v62  ;;  %v1900_v62 = vld [vmem:[%s3394_s7 + $0x10] sm:$0xff] }
 0xe61   :  { %v2742_v59 = vpop.eup %2741 }
 0xe62   :  { %1483 = vrot.lane.b32.xlu0 %v2742_v59, %s2791_s3 }
 0xe65   :  { %v2744_v60 = vpop.eup %2743 }
 0xe66   :  { %1459 = vrot.lane.b32.xlu1 %v2744_v60, %s2791_s3  ;;  %v2746_v63 = vpop.eup %2745  ;;  %v1901_v60 = vld [vmem:[%s3394_s7 + $0x18] sm:$0xff] }
 0xe67   :  { %v1477_v57 = vadd.f32 1.0, %v2746_v63  ;;  %v2748_v41 = vpop.eup %2747  ;;  %v1899_v63 = vld [vmem:[%s3394_s7 + $0x8] sm:$0xff] }
 0xe68   :  { %v1453_v0 = vadd.f32 1.0, %v2748_v41  ;;  %v1898_v41 = vld [vmem:[%s3394_s7] sm:$0xff] }
 0xe69   :  { %2749 = vrcp.f32 %v1477_v57 }
 0xe6a   :  { %2751 = vrcp.f32 %v1453_v0  ;;  %v1913_v0 = vld [vmem:[%s3394_s7 + $0x78] sm:$0xff] }
 0xe76   :  { %v2750_v1 = vpop.eup %2749 }
 0xe77   :  { %v2752_v2 = vpop.eup %2751  ;;  %v1481_v5 = vmul.f32 %v2750_v1, %v3194_v31 }
 0xe78   :  { %v1457_v8 = vmul.f32 %v2752_v2, %v3198_v49 }
 0xed4   :  { %v1484_v44 = vpop.permute.xlu0 %1483 }
 0xed5   :  { %v1486_v29 = vmul.f32 %v2750_v1, %v1484_v44  ;;  %v1911_v44 = vld [vmem:[%s3394_s7 + $0x68] sm:$0xff] }
 0xed7   :  { %1488 = vrot.lane.b32.xlu0 %v1486_v29, %s2791_s3 }
 0xed8   :  { %v1460_v3 = vpop.permute.xlu1 %1459 }
 0xed9   :  { %v1462_v4 = vmul.f32 %v2752_v2, %v1460_v3 }
 0xedb   :  { %1464 = vrot.lane.b32.xlu1 %v1462_v4, %s2791_s3 }
 0xf49   :  { %v1489_v6 = vpop.permute.xlu0 %1488 }
 0xf4a   :  { %v3234_v7 = vadd.f32 %v1489_v6, %v1481_v5 }
 0xf4c   :  { %2753 = vtanh.f32 %v3234_v7 }
 0xf4d   :  { %v1465_v9 = vpop.permute.xlu1 %1464 }
 0xf4e   :  { %v3238_v10 = vadd.f32 %v1465_v9, %v1457_v8 }
 0xf50   :  { %2755 = vtanh.f32 %v3238_v10 }
 0xf59   :  { %v2754_v13 = vpop.eup %2753 }
 0xf5a   :  { %1494 = vrot.lane.b32.xlu0 %v2754_v13, %s2791_s3 }
 0xf5d   :  { %v2756_v37 = vpop.eup %2755 }
 0xf5e   :  { %1470 = vrot.lane.b32.xlu1 %v2756_v37, %s2791_s3 }
 0xfcc   :  { %v1495_v15 = vpop.permute.xlu0 %1494 }
 0xfcd   :  { %v1497_v17 = vmul.f32 %v2750_v1, %v1495_v15  ;;  %v1912_v1 = vld [vmem:[%s3394_s7 + $0x70] sm:$0xff] }
 0xfcf   :  { %1575 = vrot.lane.b32.xlu0 %v1497_v17, %s2792_s6 }
 0xfd0   :  { %v1471_v48 = vpop.permute.xlu1 %1470 }
 0xfd1   :  { %v1473_v19 = vmul.f32 %v2752_v2, %v1471_v48 }
 0xfd3   :  { %1499 = vrot.lane.b32.xlu1 %v1473_v19, %s2792_s6 }
0x1041   :  { %v1576_v21 = vpop.permute.xlu0 %1575 }
0x1042   :  { %2589 = vmatmul.mubr.msk.f32.vlgmr.msra.gmra.mxu1 %vm59_vm0, %v1576_v21 }
0x1043   :  { %2603 = vmatpush3.msra.mxu1 %v2881_v11  ;;  %2610 = vmatprep.mubr.msk.f32.mxu1 %vm2790_vm1, %v2789_v12 }
0x1044   :  { %2604 = vmatprep.subr.mxu1 %v2789_v12 }
0x1045   :  { %v1500_v25 = vpop.permute.xlu1 %1499  ;;  %2605 = vmatpush3.msra.mxu1 %v2895_v14 }
0x1046   :  { %2578 = vmatmul.mubr.msk.f32.vlgmr.msra.gmra.mxu0 %vm59_vm0, %v1500_v25  ;;  %2606 = vmatprep.subr.mxu1 %v2789_v12 }
0x1047   :  { %2607 = vmatpush3.msra.mxu1 %v2919_v18  ;;  %2592 = vmatpush3.msra.mxu0 %v2905_v16 }
0x1048   :  { %2608 = vmatprep.subr.mxu1 %v2789_v12  ;;  %2593 = vmatprep.subr.mxu0 %v2789_v12 }
0x1049   :  { %2609 = vmatpush3.msra.mxu1 %v2948_v23  ;;  %2594 = vmatpush3.msra.mxu0 %v2929_v20 }
0x104a   :  { %2624 = vmatprep.subr.mxu1 %v2789_v12  ;;  %2595 = vmatprep.subr.mxu0 %v2789_v12 }
0x104b   :  { %2596 = vmatpush3.msra.mxu0 %v2943_v22  ;;  %2599 = vmatprep.mubr.msk.f32.mxu0 %vm2790_vm1, %v2789_v12 }
0x104c   :  { %2597 = vmatprep.subr.mxu0 %v2789_v12 }
0x104d   :  { %2598 = vmatpush3.msra.mxu0 %v2957_v24 }
0x104e   :  { %2613 = vmatprep.subr.mxu0 %v2789_v12 }
0x1102   :  { %v1645_v11 = vpop.f32.mrf.mxu1 }
0x1103   :  { %v1649_v14 = vadd.f32 %v1645_v11, %v2999_v30 }
0x1104   :  { %v2590_v16 = vpop.f32.mrf.mxu1 }
0x1105   :  { %2757 = vtanh.f32 %v1649_v14  ;;  %v2263_v27 = vmul.f32 -1.442695, %v1649_v14 }
0x1106   :  { %v1569_v18 = vpop.f32.mrf.mxu0 }
0x1107   :  { %v1573_v20 = vadd.f32 %v1569_v18, %v3021_v56 }
0x1108   :  { %v2579_v23 = vpop.f32.mrf.mxu0 }
0x1109   :  { %2759 = vtanh.f32 %v1573_v20  ;;  %v2262_v24 = vmul.f32 -1.442695, %v1573_v20 }
0x110a   :  { %2761 = vpow2.f32 %v2263_v27 }
0x110b   :  { %2763 = vpow2.f32 %v2262_v24  ;;  %v1905_v24 = vld [vmem:[%s3394_s7 + $0x38] sm:$0xff] }
0x1112   :  { %v2758_v22 = vpop.eup %2757 }
0x1113   :  { %1683 = vrot.lane.b32.xlu0 %v2758_v22, %s2791_s3 }
0x1116   :  { %v2760_v26 = vpop.eup %2759 }
0x1117   :  { %1659 = vrot.lane.b32.xlu1 %v2760_v26, %s2791_s3  ;;  %v2762_v28 = vpop.eup %2761 }
0x1118   :  { %v1677_v31 = vadd.f32 1.0, %v2762_v28  ;;  %v2764_v30 = vpop.eup %2763  ;;  %v1904_v28 = vld [vmem:[%s3394_s7 + $0x30] sm:$0xff] }
0x1119   :  { %v1653_v32 = vadd.f32 1.0, %v2764_v30  ;;  %v1902_v30 = vld [vmem:[%s3394_s7 + $0x20] sm:$0xff] }
0x111a   :  { %2765 = vrcp.f32 %v1677_v31  ;;  %v1903_v31 = vld [vmem:[%s3394_s7 + $0x28] sm:$0xff] }
0x111b   :  { %2767 = vrcp.f32 %v1653_v32 }
0x1127   :  { %v2766_v34 = vpop.eup %2765 }
0x1128   :  { %v2768_v35 = vpop.eup %2767  ;;  %v1681_v39 = vmul.f32 %v2766_v34, %v3234_v7 }
0x1129   :  { %v1657_v50 = vmul.f32 %v2768_v35, %v3238_v10 }
0x1185   :  { %v1684_v56 = vpop.permute.xlu0 %1683 }
0x1186   :  { %v1686_v49 = vmul.f32 %v2766_v34, %v1684_v56 }
0x1188   :  { %1688 = vrot.lane.b32.xlu0 %v1686_v49, %s2791_s3 }
0x1189   :  { %v1660_v38 = vpop.permute.xlu1 %1659 }
0x118a   :  { %v1662_v36 = vmul.f32 %v2768_v35, %v1660_v38 }
0x118c   :  { %1664 = vrot.lane.b32.xlu1 %v1662_v36, %s2791_s3  ;;  %v1909_v36 = vld [vmem:[%s3394_s7 + $0x58] sm:$0xff] }
0x11fa   :  { %v1689_v42 = vpop.permute.xlu0 %1688 }
0x11fb   :  { %v3274_v47 = vadd.f32 %v1689_v42, %v1681_v39  ;;  %v1908_v42 = vld [vmem:[%s3394_s7 + $0x50] sm:$0xff] }
0x11fd   :  { %2769 = vtanh.f32 %v3274_v47 }
0x11fe   :  { %v1665_v51 = vpop.permute.xlu1 %1664 }
0x11ff   :  { %v3278_v53 = vadd.f32 %v1665_v51, %v1657_v50  ;;  %v1906_v50 = vld [vmem:[%s3394_s7 + $0x40] sm:$0xff] }
0x1201   :  { %2771 = vtanh.f32 %v3278_v53 }
0x120a   :  { %v2770_v54 = vpop.eup %2769 }
0x120b   :  { %1694 = vrot.lane.b32.xlu0 %v2770_v54, %s2791_s3 }
0x120e   :  { %v2772_v45 = vpop.eup %2771 }
0x120f   :  { %1670 = vrot.lane.b32.xlu1 %v2772_v45, %s2791_s3 }
0x127d   :  { %v1695_v55 = vpop.permute.xlu0 %1694 }
0x127e   :  { %v1697_v58 = vmul.f32 %v2766_v34, %v1695_v55 }
0x1280   :  { %1775 = vrot.lane.b32.xlu0 %v1697_v58, %s2792_s6 }
0x1281   :  { %v1671_v40 = vpop.permute.xlu1 %1670 }
0x1282   :  { %v1673_v59 = vmul.f32 %v2768_v35, %v1671_v40  ;;  %v2272_v40 = vld [vmem:[%s3395_s8] ss:$0 sm:$0xff] }
0x1284   :  { %1699 = vrot.lane.b32.xlu1 %v1673_v59, %s2792_s6 }
0x12f2   :  { %v1776_v61 = vpop.permute.xlu0 %1775 }
0x12f3   :  { %2611 = vmatmul.mubr.msk.f32.vlgmr.msra.gmra.mxu1 %vm59_vm0, %v1776_v61 }
0x12f4   :  { %2625 = vmatpush3.msra.mxu1 %v1901_v60  ;;  %2632 = vmatprep.mubr.msk.f32.mxu1 %vm2790_vm1, %v2789_v12 }
0x12f5   :  { %2626 = vmatprep.subr.mxu1 %v2789_v12 }
0x12f6   :  { %2627 = vmatpush3.msra.mxu1 %v1900_v62  ;;  %v1700_v57 = vpop.permute.xlu1 %1699 }
0x12f7   :  { %2628 = vmatprep.subr.mxu1 %v2789_v12  ;;  %2600 = vmatmul.mubr.msk.f32.vlgmr.msra.gmra.mxu0 %vm59_vm0, %v1700_v57 }
0x12f8   :  { %2629 = vmatpush3.msra.mxu1 %v1899_v63  ;;  %2621 = vmatprep.mubr.msk.f32.mxu0 %vm2790_vm1, %v2789_v12 }
0x12f9   :  { %2630 = vmatprep.subr.mxu1 %v2789_v12  ;;  %2614 = vmatpush3.msra.mxu0 %v1905_v24 }
0x12fa   :  { %2631 = vmatpush3.msra.mxu1 %v1898_v41  ;;  %2615 = vmatprep.subr.mxu0 %v2789_v12 }
0x12fb   :  { %2633 = vmatmul.mubr.msk.f32.vlgmr.msra.gmra.mxu1 %vm59_vm0, %v3047_v46  ;;  %2646 = vmatprep.subr.mxu1 %v2789_v12  ;;  %v1910_v46 = vld [vmem:[%s3394_s7 + $0x60] sm:$0xff] }
0x12fc   :  { %2647 = vmatpush3.msra.mxu1 %v1913_v0  ;;  %2654 = vmatprep.mubr.msk.f32.mxu1 %vm2790_vm1, %v2789_v12 }
0x12fd   :  { %2648 = vmatprep.subr.mxu1 %v2789_v12  ;;  %2616 = vmatpush3.msra.mxu0 %v1904_v28 }
0x12fe   :  { %2649 = vmatpush3.msra.mxu1 %v1912_v1  ;;  %2617 = vmatprep.subr.mxu0 %v2789_v12 }
0x12ff   :  { %2650 = vmatprep.subr.mxu1 %v2789_v12  ;;  %2618 = vmatpush3.msra.mxu0 %v1903_v31 }
0x1300   :  { %2651 = vmatpush3.msra.mxu1 %v1911_v44  ;;  %2619 = vmatprep.subr.mxu0 %v2789_v12 }
0x1301   :  { %2652 = vmatprep.subr.mxu1 %v2789_v12  ;;  %2620 = vmatpush3.msra.mxu0 %v1902_v30 }
0x1302   :  { %2653 = vmatpush3.msra.mxu1 %v1910_v46  ;;  %2635 = vmatprep.subr.mxu0 %v2789_v12 }
0x1303   :  { %2655 = vmatmul.mubr.msk.f32.vlgmr.msra.gmra.mxu1 %vm59_vm0, %v3039_v43 }
0x13b3   :  { %v1845_v29 = vpop.f32.mrf.mxu1 }
0x13b4   :  { %v1849_v2 = vadd.f32 %v1845_v29, %v3001_v33 }
0x13b5   :  { %v2612_v3 = vpop.f32.mrf.mxu1 }
0x13b6   :  { %2773 = vtanh.f32 %v1849_v2  ;;  %v2267_v33 = vmul.f32 -1.442695, %v1849_v2 }
0x13b7   :  { %v1769_v4 = vpop.f32.mrf.mxu0 }
0x13b8   :  { %v1773_v5 = vadd.f32 %v1769_v4, %v3019_v52 }
0x13b9   :  { %v2601_v6 = vpop.f32.mrf.mxu0 }
0x13ba   :  { %2775 = vtanh.f32 %v1773_v5  ;;  %v2266_v37 = vmul.f32 -1.442695, %v1773_v5 }
0x13bb   :  { %v3330_v7 = vpop.f32.mrf.mxu1  ;;  %2777 = vpow2.f32 %v2267_v33 }
0x13bc   :  { %2779 = vpow2.f32 %v2266_v37 }
0x13bd   :  { %v2634_v8 = vpop.f32.mrf.mxu1 }
0x13c3   :  { %v2774_v9 = vpop.eup %2773  ;;  %v3332_v10 = vpop.f32.mrf.mxu1 }
0x13c4   :  { %1883 = vrot.lane.b32.xlu0 %v2774_v9, %s2791_s3 }
0x13c5   :  { %v2656_v13 = vpop.f32.mrf.mxu1 }
0x13c7   :  { %v2776_v43 = vpop.eup %2775 }
0x13c8   :  { %1859 = vrot.lane.b32.xlu1 %v2776_v43, %s2791_s3  ;;  %v2778_v15 = vpop.eup %2777 }
0x13c9   :  { %v1877_v52 = vadd.f32 1.0, %v2778_v15  ;;  %v2780_v17 = vpop.eup %2779 }
0x13ca   :  { %v1853_v48 = vadd.f32 1.0, %v2780_v17 }
0x13cb   :  { %2781 = vrcp.f32 %v1877_v52 }
0x13cc   :  { %2783 = vrcp.f32 %v1853_v48 }
0x13d8   :  { %v2782_v19 = vpop.eup %2781 }
0x13d9   :  { %v2784_v11 = vpop.eup %2783  ;;  %v1881_v18 = vmul.f32 %v2782_v19, %v3274_v47  ;;  %v1907_v47 = vld [vmem:[%s3394_s7 + $0x48] sm:$0xff] }
0x13da   :  { %v1857_v22 = vmul.f32 %v2784_v11, %v3278_v53 }
0x1436   :  { %v1884_v21 = vpop.permute.xlu0 %1883 }
0x1437   :  { %v1886_v25 = vmul.f32 %v2782_v19, %v1884_v21 }
0x1439   :  { %1888 = vrot.lane.b32.xlu0 %v1886_v25, %s2791_s3 }
0x143a   :  { %v1860_v14 = vpop.permute.xlu1 %1859 }
0x143b   :  { %v1862_v16 = vmul.f32 %v2784_v11, %v1860_v14 }
0x143d   :  { %1864 = vrot.lane.b32.xlu1 %v1862_v16, %s2791_s3 }
0x14ab   :  { %v1889_v20 = vpop.permute.xlu0 %1888 }
0x14ac   :  { %v1891_v23 = vadd.f32 %v1889_v20, %v1881_v18 }
0x14ae   :  { %2785 = vtanh.f32 %v1891_v23 }
0x14af   :  { %v1865_v26 = vpop.permute.xlu1 %1864 }
0x14b0   :  { %v1867_v27 = vadd.f32 %v1865_v26, %v1857_v22 }
0x14b2   :  { %2787 = vtanh.f32 %v1867_v27 }
0x14bb   :  { %v2786_v32 = vpop.eup %2785 }
0x14bc   :  { %1894 = vrot.lane.b32.xlu0 %v2786_v32, %s2791_s3 }
0x14bf   :  { %v2788_v34 = vpop.eup %2787 }
0x14c0   :  { %1870 = vrot.lane.b32.xlu1 %v2788_v34, %s2791_s3 }
0x152e   :  { %v1895_v56 = vpop.permute.xlu0 %1894 }
0x152f   :  { %v1897_v49 = vmul.f32 %v2782_v19, %v1895_v56 }
0x1531   :  { %1915 = vrot.lane.b32.xlu0 %v1897_v49, %s2792_s6 }
0x1532   :  { %v1871_v35 = vpop.permute.xlu1 %1870 }
0x1533   :  { %v1873_v38 = vmul.f32 %v2784_v11, %v1871_v35 }
0x1535   :  { %2060 = vrot.lane.b32.xlu1 %v1873_v38, %s2792_s6 }
0x15a3   :  { %v1916_v39 = vpop.permute.xlu0 %1915 }
0x15a4   :  { %2622 = vmatmul.mubr.msk.f32.vlgmr.msra.gmra.mxu0 %vm59_vm0, %v1916_v39 }
0x15a5   :  { %2636 = vmatpush3.msra.mxu0 %v1909_v36  ;;  %2643 = vmatprep.mubr.msk.f32.mxu0 %vm2790_vm1, %v2789_v12 }
0x15a6   :  { %2637 = vmatprep.subr.mxu0 %v2789_v12 }
0x15a7   :  { %2638 = vmatpush3.msra.mxu0 %v1908_v42  ;;  %v2061_v51 = vpop.permute.xlu1 %2060 }
0x15a8   :  { %2639 = vmatprep.subr.mxu0 %v2789_v12 }
0x15a9   :  { %2640 = vmatpush3.msra.mxu0 %v1907_v47 }
0x15aa   :  { %2641 = vmatprep.subr.mxu0 %v2789_v12 }
0x15ab   :  { %2642 = vmatpush3.msra.mxu0 %v1906_v50 }
0x15ac   :  { %2644 = vmatmul.mubr.msk.f32.vlgmr.msra.gmra.mxu0 %vm59_vm0, %v2061_v51 }
0x1664   :  { %v1985_v53 = vpop.f32.mrf.mxu0 }
0x1665   :  { %v2056_v45 = vadd.f32 %v3330_v7, %v1985_v53 }
0x1666   :  { %v2623_v54 = vpop.f32.mrf.mxu0 }
0x166c   :  { %v2130_v55 = vpop.f32.mrf.mxu0 }
0x166d   :  { %v2134_v58 = vadd.f32 %v2130_v55, %v2056_v45 }
0x166e   :  { %v2645_v59 = vpop.f32.mrf.mxu0 }
0x166f   :  { %v2205_v60 = vadd.f32 %v3332_v10, %v2134_v58 }
0x1671   :  { %v2213_v61 = vadd.f32 %v2272_v40, %v2205_v60 }
0x1673   :  { %2215 = vst.msk [vmem:[%s3396_s9] sm:$0xff] %vm2214_vm2, %v2213_v61 }

</bundles_post_ra>
